<compile_context>
chip_gen: v6e
topology: v6e:2x2x1
jax: 0.10.0
libtpu: 0.0.40
codegen_flags: <defaults>
</compile_context>

<pallas_src>
import math

import jax
import jax.numpy as jnp
import numpy as np
from jax.experimental import pallas as pl
from jax.experimental.pallas import tpu as pltpu

BN_EPS = 1e-5


# ---------------------------------------------------------------------------
# Bilinear interpolation matrix matching nn.Upsample(mode='bilinear',
# align_corners=False): out = M @ in along one spatial axis.
# ---------------------------------------------------------------------------
def _bilinear_matrix(in_size, out_size):
    scale = in_size / out_size
    m = np.zeros((out_size, in_size), np.float32)
    for i in range(out_size):
        src = (i + 0.5) * scale - 0.5
        src = max(src, 0.0)                       # PyTorch clamps negative src
        i0 = min(int(np.floor(src)), in_size - 1)
        i1 = min(i0 + 1, in_size - 1)             # right-edge duplication
        frac = src - i0
        m[i, i0] += 1.0 - frac
        m[i, i1] += frac
    return m


# ---------------------------------------------------------------------------
# Fused kernel factory (all sizes / shifts are static Python ints).
# ---------------------------------------------------------------------------
def _make_kernel(NB, Cin, Cout, K, HWin, HWout, shifts):
    KK = K * K

    def kernel(x_ref, u_ref, m_ref, w_ref, s_ref, b_ref, o_ref, patch_ref):
        # x_ref   : (NB, Cin, HWin)      flattened input block
        # u_ref   : (HWin, HWout)        kron(Uh^T, Uw^T) upsample matrix (f32, resident)
        # m_ref   : (KK, HWout)          per-tap boundary masks (f32, resident)
        # w_ref   : (Cout, KK*Cin)       conv weights, tap-major / cin-minor (bf16)
        # s_ref/b_ref : (Cout, 1)        folded BN scale / bias (f32)
        # o_ref   : (NB, Cout, HWout)
        # patch_ref: (KK*Cin, NB*HWout)  bf16 im2col scratch

        # Bilinear upsample for all NB*Cin channels in ONE matmul (K = HWin).
        xm = x_ref[...].reshape(NB * Cin, HWin)
        up = jnp.dot(xm, u_ref[...], preferred_element_type=jnp.float32)  # (NB*Cin, HWout)

        # im2col via lane rolls + precomputed border masks (no padded scratch,
        # no strided sub-window slices, no (H,W)->flat relayouts).
        for t in range(KK):
            base = up if shifts[t] == 0 else pltpu.roll(up, shifts[t], axis=1)
            rolled = (base * m_ref[t:t + 1, :]).astype(patch_ref.dtype)
            for n in range(NB):
                patch_ref[t * Cin:(t + 1) * Cin,
                          n * HWout:(n + 1) * HWout] = rolled[n * Cin:(n + 1) * Cin, :]

        # One MXU matmul for the whole conv over the batch block, then the
        # folded BN affine (+ conv bias) and ReLU in f32.
        y = jnp.dot(w_ref[...], patch_ref[...], preferred_element_type=jnp.float32)
        y = y * s_ref[...] + b_ref[...]
        y = jnp.maximum(y, 0.0)
        for n in range(NB):
            o_ref[n, :, :] = y[:, n * HWout:(n + 1) * HWout].astype(o_ref.dtype)

    return kernel


# ---------------------------------------------------------------------------
# Wrapper: builds the Kronecker upsample matrix, tap shifts/masks, weight
# matrix, and calls the fused kernel.
# ---------------------------------------------------------------------------
def reconstruct(x_nchw, params, *, kernel_size=3, scale_factor=2):
    """Reconstruct forward: (N, Cin, H, W) -> (N, Cout, H*s, W*s)."""
    if x_nchw is None:
        return None
    assert kernel_size == 3, "fused Pallas path implemented for kernel_size=3 (padding=1)"
    w_hwio, scale, bias = params
    N, Cin, H_in, W_in = x_nchw.shape
    K = kernel_size
    pad = 1
    Cout = w_hwio.shape[-1]
    H_up, W_up = H_in * scale_factor, W_in * scale_factor
    H_c, W_c = H_up, W_up                       # 'same' conv for K=3 / pad=1
    HWin, HWout = H_in * W_in, H_c * W_c

    # Upsample as a single Kronecker matmul: up = x.reshape(-1, HWin) @ U.
    uh = _bilinear_matrix(H_in, H_up)           # (H_up, H_in)
    uw = _bilinear_matrix(W_in, W_up)           # (W_up, W_in)
    U = jnp.asarray(np.kron(uh.T, uw.T))        # (HWin, HWout), f32, VMEM-resident

    # Per-tap roll amounts + boundary masks (host precomputed, VMEM-resident).
    shifts = []
    masks = np.zeros((K * K, HWout), np.float32)
    for dy in range(K):
        for dx in range(K):
            t = dy * K + dx
            off = (dy - pad) * W_up + (dx - pad)
            shifts.append((-off) % HWout)       # jnp.roll-style shift, non-negative
            yy = np.arange(H_c)[:, None] + dy - pad
            xx = np.arange(W_c)[None, :] + dx - pad
            valid = (yy >= 0) & (yy < H_up) & (xx >= 0) & (xx < W_up)
            masks[t] = valid.astype(np.float32).reshape(-1)
    masks = jnp.asarray(masks)

    # HWIO -> (Cout, K*K*Cin) in bf16; row order matches im2col (tap-major, cin-minor).
    wmat = jnp.transpose(w_hwio, (3, 0, 1, 2)).reshape(Cout, K * K * Cin).astype(jnp.bfloat16)
    s_col = scale.reshape(Cout, 1).astype(jnp.float32)
    b_col = bias.reshape(Cout, 1).astype(jnp.float32)

    # Batch blocking: at most 2 grid steps ("parallel" keeps both v7x TCs busy;
    # on v5e/v6e the 2-step loop costs < 1 us and each step batches NB elements).
    grid_steps = 2 if (N >= 2 and N % 2 == 0) else 1
    NB = N // grid_steps

    x_flat = x_nchw.reshape(N, Cin, HWin)       # contiguous, free reshape

    kernel = _make_kernel(NB, Cin, Cout, K, HWin, HWout, tuple(shifts))

    out = pl.pallas_call(
        kernel,
        out_shape=jax.ShapeDtypeStruct((N, Cout, HWout), x_nchw.dtype),
        grid=(grid_steps,),
        in_specs=[
            pl.BlockSpec((NB, Cin, HWin), lambda g: (g, 0, 0)),
            pl.BlockSpec((HWin, HWout), lambda g: (0, 0)),       # resident across steps
            pl.BlockSpec((K * K, HWout), lambda g: (0, 0)),      # resident across steps
            pl.BlockSpec((Cout, K * K * Cin), lambda g: (0, 0)),
            pl.BlockSpec((Cout, 1), lambda g: (0, 0)),
            pl.BlockSpec((Cout, 1), lambda g: (0, 0)),
        ],
        out_specs=pl.BlockSpec((NB, Cout, HWout), lambda g: (g, 0, 0)),
        scratch_shapes=[
            pltpu.VMEM((K * K * Cin, NB * HWout), jnp.bfloat16),  # im2col patch
        ],
        compiler_params=pltpu.CompilerParams(dimension_semantics=("parallel",)),
    )(x_flat, U, masks, wmat, s_col, b_col)

    return out.reshape(N, Cout, H_c, W_c)


# ---------------------------------------------------------------------------
# Deterministic parameters (Conv2d + BatchNorm2d, PyTorch-style init, folded).
# ---------------------------------------------------------------------------
def make_params(key, cin, cout, k):
    ks = jax.random.split(key, 6)
    bound = 1.0 / math.sqrt(cin * k * k)
    w = jax.random.uniform(ks[0], (k, k, cin, cout), jnp.float32, -bound, bound)  # HWIO
    conv_b = jax.random.uniform(ks[1], (cout,), jnp.float32, -bound, bound)
    gamma = jax.random.uniform(ks[2], (cout,), jnp.float32, 0.5, 1.5)
    beta = jax.random.uniform(ks[3], (cout,), jnp.float32, -0.5, 0.5)
    run_mean = jax.random.uniform(ks[4], (cout,), jnp.float32, -0.1, 0.1)
    run_var = jax.random.uniform(ks[5], (cout,), jnp.float32, 0.5, 1.5)
    scale = gamma / jnp.sqrt(run_var + BN_EPS)
    bias = (conv_b - run_mean) * scale + beta
    return w, scale, bias


# ---------------------------------------------------------------------------
# Pure-JAX reference for verification (independent conv via lax.conv).
# ---------------------------------------------------------------------------
def reconstruct_ref(x_nchw, params, *, kernel_size=3, scale_factor=2):
    w_hwio, scale, bias = params
    K = kernel_size
    pad = 1 if K == 3 else 0
    N, Cin, H_in, W_in = x_nchw.shape
    uh = jnp.asarray(_bilinear_matrix(H_in, H_in * scale_factor))  # (H_up, H_in)
    uw = jnp.asarray(_bilinear_matrix(W_in, W_in * scale_factor))  # (W_up, W_in)
    xu = jnp.einsum('Hh,nchw->ncHw', uh, x_nchw)
    xu = jnp.einsum('Ww,ncHw->ncHW', uw, xu)
    x_nhwc = jnp.transpose(xu, (0, 2, 3, 1))
    y = jax.lax.conv_general_dilated(
        x_nhwc, w_hwio, window_strides=(1, 1), padding=((pad, pad), (pad, pad)),
        dimension_numbers=("NHWC", "HWIO", "NHWC"))
    y = y * scale.reshape(1, 1, 1, -1) + bias.reshape(1, 1, 1, -1)
    y = jnp.maximum(y, 0.0)
    return jnp.transpose(y, (0, 3, 1, 2))


if __name__ == "__main__":
    N, Cin, Cout, H, W = 2, 4, 8, 16, 16
    K, SF = 3, 2

    root = jax.random.PRNGKey(0)
    kx, kp = jax.random.split(root)
    x = jax.random.normal(kx, (N, Cin, H, W), jnp.float32)
    params = make_params(kp, Cin, Cout, K)

    out = jax.block_until_ready(reconstruct(x, params, kernel_size=K, scale_factor=SF))
    ref = jax.block_until_ready(reconstruct_ref(x, params, kernel_size=K, scale_factor=SF))

    assert out.shape == (N, Cout, H * SF, W * SF), out.shape
    # bf16 patch/weights (f32 accumulation) -> ~1e-3 typical error; 1e-2 tolerance.
    np.testing.assert_allclose(np.asarray(out), np.asarray(ref), rtol=1e-2, atol=1e-2)
    print("KERNEL_OK")
</pallas_src>

<mosaic_0001>
module attributes {stable_mosaic.version = 11 : i64} {
  func.func @kernel(%arg0: i32, %arg1: memref<1x4x256xf32, #tpu.memory_space<vmem>>, %arg2: memref<256x1024xf32, #tpu.memory_space<vmem>>, %arg3: memref<9x1024xf32, #tpu.memory_space<vmem>>, %arg4: memref<8x36xbf16, #tpu.memory_space<vmem>>, %arg5: memref<8x1xf32, #tpu.memory_space<vmem>>, %arg6: memref<8x1xf32, #tpu.memory_space<vmem>>, %arg7: memref<1x8x1024xf32, #tpu.memory_space<vmem>>, %arg8: memref<36x1024xbf16, #tpu.memory_space<vmem>>) attributes {dimension_semantics = [#tpu.dimension_semantics<parallel>], iteration_bounds = array<i64: 2>, scalar_prefetch = 0 : i64, scratch_operands = 1 : i64, tpu.core_type = #tpu.core_type<tc>, window_params = [{transform_indices = @transform_0, window_bounds = array<i64: 1, 4, 256>}, {pipeline_mode = #tpu.pipeline_mode<synchronous>, transform_indices = @transform_1, window_bounds = array<i64: 256, 1024>}, {pipeline_mode = #tpu.pipeline_mode<synchronous>, transform_indices = @transform_2, window_bounds = array<i64: 9, 1024>}, {pipeline_mode = #tpu.pipeline_mode<synchronous>, transform_indices = @transform_3, window_bounds = array<i64: 8, 36>}, {pipeline_mode = #tpu.pipeline_mode<synchronous>, transform_indices = @transform_4, window_bounds = array<i64: 8, 1>}, {pipeline_mode = #tpu.pipeline_mode<synchronous>, transform_indices = @transform_5, window_bounds = array<i64: 8, 1>}, {transform_indices = @transform_6, window_bounds = array<i64: 1, 8, 1024>}]} {
    %c0 = arith.constant 0 : index
    %c0_0 = arith.constant 0 : index
    %c0_1 = arith.constant 0 : index
    %0 = vector.load %arg1[%c0, %c0_0, %c0_1] : memref<1x4x256xf32, #tpu.memory_space<vmem>>, vector<1x4x256xf32>
    %1 = vector.shape_cast %0 : vector<1x4x256xf32> to vector<4x256xf32>
    %c0_2 = arith.constant 0 : index
    %c0_3 = arith.constant 0 : index
    %2 = vector.load %arg2[%c0_2, %c0_3] : memref<256x1024xf32, #tpu.memory_space<vmem>>, vector<256x1024xf32>
    %cst = arith.constant dense<0.000000e+00> : vector<4x1024xf32>
    %3 = tpu.matmul %1, %2, %cst {dimension_numbers = #tpu.dot_dimension_numbers<[1], [0], [0], [1], [0, 0, 1, 1], [], []>} : vector<4x256xf32>, vector<256x1024xf32>, vector<4x1024xf32> -> vector<4x1024xf32>
    %c33_i32 = arith.constant 33 : i32
    %4 = tpu.dynamic_rotate %3 by %c33_i32 dim 1 : vector<4x1024xf32>, i32 -> vector<4x1024xf32>
    %c0_4 = arith.constant 0 : index
    %c0_5 = arith.constant 0 : index
    %5 = vector.load %arg3[%c0_4, %c0_5] : memref<9x1024xf32, #tpu.memory_space<vmem>>, vector<1x1024xf32>
    %6 = vector.broadcast %5 : vector<1x1024xf32> to vector<4x1024xf32>
    %7 = arith.mulf %4, %6 : vector<4x1024xf32>
    %8 = arith.truncf %7 : vector<4x1024xf32> to vector<4x1024xbf16>
    %c0_6 = arith.constant 0 : index
    %c0_7 = arith.constant 0 : index
    %9 = vector.load %arg8[%c0_6, %c0_7] : memref<36x1024xbf16, #tpu.memory_space<vmem>>, vector<4x1024xbf16>
    tpu.vector_store %arg8[%c0_6, %c0_7], %8 {strides = array<i32>} : memref<36x1024xbf16, #tpu.memory_space<vmem>>, vector<4x1024xbf16>,
    %c32_i32 = arith.constant 32 : i32
    %10 = tpu.dynamic_rotate %3 by %c32_i32 dim 1 : vector<4x1024xf32>, i32 -> vector<4x1024xf32>
    %c1 = arith.constant 1 : index
    %c0_8 = arith.constant 0 : index
    %11 = vector.load %arg3[%c1, %c0_8] : memref<9x1024xf32, #tpu.memory_space<vmem>>, vector<1x1024xf32>
    %12 = vector.broadcast %11 : vector<1x1024xf32> to vector<4x1024xf32>
    %13 = arith.mulf %10, %12 : vector<4x1024xf32>
    %14 = arith.truncf %13 : vector<4x1024xf32> to vector<4x1024xbf16>
    %c4 = arith.constant 4 : index
    %c0_9 = arith.constant 0 : index
    %15 = vector.load %arg8[%c4, %c0_9] : memref<36x1024xbf16, #tpu.memory_space<vmem>>, vector<4x1024xbf16>
    tpu.vector_store %arg8[%c4, %c0_9], %14 {strides = array<i32>} : memref<36x1024xbf16, #tpu.memory_space<vmem>>, vector<4x1024xbf16>,
    %c31_i32 = arith.constant 31 : i32
    %16 = tpu.dynamic_rotate %3 by %c31_i32 dim 1 : vector<4x1024xf32>, i32 -> vector<4x1024xf32>
    %c2 = arith.constant 2 : index
    %c0_10 = arith.constant 0 : index
    %17 = vector.load %arg3[%c2, %c0_10] : memref<9x1024xf32, #tpu.memory_space<vmem>>, vector<1x1024xf32>
    %18 = vector.broadcast %17 : vector<1x1024xf32> to vector<4x1024xf32>
    %19 = arith.mulf %16, %18 : vector<4x1024xf32>
    %20 = arith.truncf %19 : vector<4x1024xf32> to vector<4x1024xbf16>
    %c8 = arith.constant 8 : index
    %c0_11 = arith.constant 0 : index
    %21 = vector.load %arg8[%c8, %c0_11] : memref<36x1024xbf16, #tpu.memory_space<vmem>>, vector<4x1024xbf16>
    tpu.vector_store %arg8[%c8, %c0_11], %20 {strides = array<i32>} : memref<36x1024xbf16, #tpu.memory_space<vmem>>, vector<4x1024xbf16>,
    %c1_i32 = arith.constant 1 : i32
    %22 = tpu.dynamic_rotate %3 by %c1_i32 dim 1 : vector<4x1024xf32>, i32 -> vector<4x1024xf32>
    %c3 = arith.constant 3 : index
    %c0_12 = arith.constant 0 : index
    %23 = vector.load %arg3[%c3, %c0_12] : memref<9x1024xf32, #tpu.memory_space<vmem>>, vector<1x1024xf32>
    %24 = vector.broadcast %23 : vector<1x1024xf32> to vector<4x1024xf32>
    %25 = arith.mulf %22, %24 : vector<4x1024xf32>
    %26 = arith.truncf %25 : vector<4x1024xf32> to vector<4x1024xbf16>
    %c12 = arith.constant 12 : index
    %c0_13 = arith.constant 0 : index
    %27 = vector.load %arg8[%c12, %c0_13] : memref<36x1024xbf16, #tpu.memory_space<vmem>>, vector<4x1024xbf16>
    tpu.vector_store %arg8[%c12, %c0_13], %26 {strides = array<i32>} : memref<36x1024xbf16, #tpu.memory_space<vmem>>, vector<4x1024xbf16>,
    %c4_14 = arith.constant 4 : index
    %c0_15 = arith.constant 0 : index
    %28 = vector.load %arg3[%c4_14, %c0_15] : memref<9x1024xf32, #tpu.memory_space<vmem>>, vector<1x1024xf32>
    %29 = vector.broadcast %28 : vector<1x1024xf32> to vector<4x1024xf32>
    %30 = arith.mulf %3, %29 : vector<4x1024xf32>
    %31 = arith.truncf %30 : vector<4x1024xf32> to vector<4x1024xbf16>
    %c16 = arith.constant 16 : index
    %c0_16 = arith.constant 0 : index
    %32 = vector.load %arg8[%c16, %c0_16] : memref<36x1024xbf16, #tpu.memory_space<vmem>>, vector<4x1024xbf16>
    tpu.vector_store %arg8[%c16, %c0_16], %31 {strides = array<i32>} : memref<36x1024xbf16, #tpu.memory_space<vmem>>, vector<4x1024xbf16>,
    %c1023_i32 = arith.constant 1023 : i32
    %33 = tpu.dynamic_rotate %3 by %c1023_i32 dim 1 : vector<4x1024xf32>, i32 -> vector<4x1024xf32>
    %c5 = arith.constant 5 : index
    %c0_17 = arith.constant 0 : index
    %34 = vector.load %arg3[%c5, %c0_17] : memref<9x1024xf32, #tpu.memory_space<vmem>>, vector<1x1024xf32>
    %35 = vector.broadcast %34 : vector<1x1024xf32> to vector<4x1024xf32>
    %36 = arith.mulf %33, %35 : vector<4x1024xf32>
    %37 = arith.truncf %36 : vector<4x1024xf32> to vector<4x1024xbf16>
    %c20 = arith.constant 20 : index
    %c0_18 = arith.constant 0 : index
    %38 = vector.load %arg8[%c20, %c0_18] : memref<36x1024xbf16, #tpu.memory_space<vmem>>, vector<4x1024xbf16>
    tpu.vector_store %arg8[%c20, %c0_18], %37 {strides = array<i32>} : memref<36x1024xbf16, #tpu.memory_space<vmem>>, vector<4x1024xbf16>,
    %c993_i32 = arith.constant 993 : i32
    %39 = tpu.dynamic_rotate %3 by %c993_i32 dim 1 : vector<4x1024xf32>, i32 -> vector<4x1024xf32>
    %c6 = arith.constant 6 : index
    %c0_19 = arith.constant 0 : index
    %40 = vector.load %arg3[%c6, %c0_19] : memref<9x1024xf32, #tpu.memory_space<vmem>>, vector<1x1024xf32>
    %41 = vector.broadcast %40 : vector<1x1024xf32> to vector<4x1024xf32>
    %42 = arith.mulf %39, %41 : vector<4x1024xf32>
    %43 = arith.truncf %42 : vector<4x1024xf32> to vector<4x1024xbf16>
    %c24 = arith.constant 24 : index
    %c0_20 = arith.constant 0 : index
    %44 = vector.load %arg8[%c24, %c0_20] : memref<36x1024xbf16, #tpu.memory_space<vmem>>, vector<4x1024xbf16>
    tpu.vector_store %arg8[%c24, %c0_20], %43 {strides = array<i32>} : memref<36x1024xbf16, #tpu.memory_space<vmem>>, vector<4x1024xbf16>,
    %c992_i32 = arith.constant 992 : i32
    %45 = tpu.dynamic_rotate %3 by %c992_i32 dim 1 : vector<4x1024xf32>, i32 -> vector<4x1024xf32>
    %c7 = arith.constant 7 : index
    %c0_21 = arith.constant 0 : index
    %46 = vector.load %arg3[%c7, %c0_21] : memref<9x1024xf32, #tpu.memory_space<vmem>>, vector<1x1024xf32>
    %47 = vector.broadcast %46 : vector<1x1024xf32> to vector<4x1024xf32>
    %48 = arith.mulf %45, %47 : vector<4x1024xf32>
    %49 = arith.truncf %48 : vector<4x1024xf32> to vector<4x1024xbf16>
    %c28 = arith.constant 28 : index
    %c0_22 = arith.constant 0 : index
    %50 = vector.load %arg8[%c28, %c0_22] : memref<36x1024xbf16, #tpu.memory_space<vmem>>, vector<4x1024xbf16>
    tpu.vector_store %arg8[%c28, %c0_22], %49 {strides = array<i32>} : memref<36x1024xbf16, #tpu.memory_space<vmem>>, vector<4x1024xbf16>,
    %c991_i32 = arith.constant 991 : i32
    %51 = tpu.dynamic_rotate %3 by %c991_i32 dim 1 : vector<4x1024xf32>, i32 -> vector<4x1024xf32>
    %c8_23 = arith.constant 8 : index
    %c0_24 = arith.constant 0 : index
    %52 = vector.load %arg3[%c8_23, %c0_24] : memref<9x1024xf32, #tpu.memory_space<vmem>>, vector<1x1024xf32>
    %53 = vector.broadcast %52 : vector<1x1024xf32> to vector<4x1024xf32>
    %54 = arith.mulf %51, %53 : vector<4x1024xf32>
    %55 = arith.truncf %54 : vector<4x1024xf32> to vector<4x1024xbf16>
    %c32 = arith.constant 32 : index
    %c0_25 = arith.constant 0 : index
    %56 = vector.load %arg8[%c32, %c0_25] : memref<36x1024xbf16, #tpu.memory_space<vmem>>, vector<4x1024xbf16>
    tpu.vector_store %arg8[%c32, %c0_25], %55 {strides = array<i32>} : memref<36x1024xbf16, #tpu.memory_space<vmem>>, vector<4x1024xbf16>,
    %c0_26 = arith.constant 0 : index
    %c0_27 = arith.constant 0 : index
    %57 = vector.load %arg4[%c0_26, %c0_27] : memref<8x36xbf16, #tpu.memory_space<vmem>>, vector<8x36xbf16>
    %c0_28 = arith.constant 0 : index
    %c0_29 = arith.constant 0 : index
    %58 = vector.load %arg8[%c0_28, %c0_29] : memref<36x1024xbf16, #tpu.memory_space<vmem>>, vector<36x1024xbf16>
    %cst_30 = arith.constant dense<0.000000e+00> : vector<8x1024xf32>
    %59 = tpu.matmul %57, %58, %cst_30 {dimension_numbers = #tpu.dot_dimension_numbers<[1], [0], [0], [1], [0, 0, 1, 1], [], []>} : vector<8x36xbf16>, vector<36x1024xbf16>, vector<8x1024xf32> -> vector<8x1024xf32>
    %c0_31 = arith.constant 0 : index
    %c0_32 = arith.constant 0 : index
    %60 = vector.load %arg5[%c0_31, %c0_32] : memref<8x1xf32, #tpu.memory_space<vmem>>, vector<8x1xf32>
    %61 = vector.broadcast %60 : vector<8x1xf32> to vector<8x1024xf32>
    %62 = arith.mulf %59, %61 : vector<8x1024xf32>
    %c0_33 = arith.constant 0 : index
    %c0_34 = arith.constant 0 : index
    %63 = vector.load %arg6[%c0_33, %c0_34] : memref<8x1xf32, #tpu.memory_space<vmem>>, vector<8x1xf32>
    %64 = vector.broadcast %63 : vector<8x1xf32> to vector<8x1024xf32>
    %65 = arith.addf %62, %64 : vector<8x1024xf32>
    %cst_35 = arith.constant 0.000000e+00 : f32
    %66 = vector.broadcast %cst_35 : f32 to vector<8x1024xf32>
    %67 = arith.maximumf %65, %66 : vector<8x1024xf32>
    %c0_36 = arith.constant 0 : index
    %c0_37 = arith.constant 0 : index
    %c0_38 = arith.constant 0 : index
    %68 = vector.load %arg7[%c0_36, %c0_37, %c0_38] : memref<1x8x1024xf32, #tpu.memory_space<vmem>>, vector<1x8x1024xf32>
    %69 = vector.shape_cast %68 : vector<1x8x1024xf32> to vector<8x1024xf32>
    %70 = vector.shape_cast %67 : vector<8x1024xf32> to vector<1x8x1024xf32>
    tpu.vector_store %arg7[%c0_36, %c0_37, %c0_38], %70 {strides = array<i32>} : memref<1x8x1024xf32, #tpu.memory_space<vmem>>, vector<1x8x1024xf32>,
    return
  }
  func.func @transform_0(%arg0: i32) -> (i32, i32, i32) {
    %c0_i32 = arith.constant 0 : i32
    %c0_i32_0 = arith.constant 0 : i32
    %c0_i32_1 = arith.constant 0 : i32
    return %arg0, %c0_i32, %c0_i32_0 : i32, i32, i32
  }
  func.func @transform_1(%arg0: i32) -> (i32, i32) {
    %c0_i32 = arith.constant 0 : i32
    %c0_i32_0 = arith.constant 0 : i32
    %c0_i32_1 = arith.constant 0 : i32
    return %c0_i32, %c0_i32_0 : i32, i32
  }
  func.func @transform_2(%arg0: i32) -> (i32, i32) {
    %c0_i32 = arith.constant 0 : i32
    %c0_i32_0 = arith.constant 0 : i32
    %c0_i32_1 = arith.constant 0 : i32
    return %c0_i32, %c0_i32_0 : i32, i32
  }
  func.func @transform_3(%arg0: i32) -> (i32, i32) {
    %c0_i32 = arith.constant 0 : i32
    %c0_i32_0 = arith.constant 0 : i32
    %c0_i32_1 = arith.constant 0 : i32
    return %c0_i32, %c0_i32_0 : i32, i32
  }
  func.func @transform_4(%arg0: i32) -> (i32, i32) {
    %c0_i32 = arith.constant 0 : i32
    %c0_i32_0 = arith.constant 0 : i32
    %c0_i32_1 = arith.constant 0 : i32
    return %c0_i32, %c0_i32_0 : i32, i32
  }
  func.func @transform_5(%arg0: i32) -> (i32, i32) {
    %c0_i32 = arith.constant 0 : i32
    %c0_i32_0 = arith.constant 0 : i32
    %c0_i32_1 = arith.constant 0 : i32
    return %c0_i32, %c0_i32_0 : i32, i32
  }
  func.func @transform_6(%arg0: i32) -> (i32, i32, i32) {
    %c0_i32 = arith.constant 0 : i32
    %c0_i32_0 = arith.constant 0 : i32
    %c0_i32_1 = arith.constant 0 : i32
    return %arg0, %c0_i32, %c0_i32_0 : i32, i32, i32
  }
}

</mosaic_0001>

<bundles_post_ra>
// kernel: tpu_custom_call.1
= control target key start
LH: loop header
LB: loop body
LE: loop exit
PB: predicated region body
PF: predicated region fallthrough
CT: control target
= control target key end

     0   :  { %11 = vsyncpa [#allocation4], 0  ;;  %s3558_s0 = inlined_call_operand.vmem [shape: f32[2,4,256], index: 0, kind: input, shape index: {}]   ;;  %s3559_s1 = inlined_call_operand.hbm [shape: f32[256,1024], index: 1, kind: input, shape index: {}]   ;;  %s3560_s2 = inlined_call_operand.hbm [shape: f32[9,1024], index: 2, kind: input, shape index: {}]   ;;  %s3561_s3 = inlined_call_operand.vmem [shape: bf16[8,36], index: 3, kind: input, shape index: {}]   ;;  %s3562_s4 = inlined_call_operand.vmem [shape: f32[8,1], index: 4, kind: input, shape index: {}]   ;;  %s3563_s5 = inlined_call_operand.vmem [shape: f32[8,1], index: 5, kind: input, shape index: {}]   ;;  %s3564_s6 = inlined_call_operand.hbm [shape: f32[2,8,1024], index: 6, kind: output, shape index: {}]  }
   0x1   :  { %12 = vsyncpa [#allocation7], 0 }
   0x2   :  { %13 = vsyncpa [#allocation5], 0 }
   0x3   :  { %15 = vsyncpa [#allocation5 + $0x1], 0  ;;  %s2693_s21 = smov 0   ;;  %s2695_s22 = smov 0  }
   0x4   :  { %s2697_s23 = smov 0   ;;  %s2699_s24 = smov 0  }
   0x5 LB: > { %s2714_s25 = sadd.s32 4294967295, %s2642_s24   ;;  %s2297_s26 = sadd.s32 4294967294, %s2642_s24   ;;  %s2642_s24 = sphi %s2699_s24, %s3603_s24   ;;  %s2638_s23 = sphi %s2697_s23, %s3602_s23   ;;  %s2634_s22 = sphi %s2695_s22, %s3601_s22   ;;  %s2630_s21 = sphi %s2693_s21, %s3600_s21  }
   0x6   : > { %s2718_s27 = sadd.s32 1, %s2642_s24   ;;  %s159_s28 = sadd.s32 1, %s2638_s23 }
   0x7   : > { %s156_s29 = ssub.s32 %s2642_s24, %s2718_s27  ;;  %p169_p0 = scmp.ne.s32.totalorder %s2638_s23, %s2634_s22 }
   0x8   : > { %p157_p1 = scmp.eq.s32.totalorder %s156_s29, 0  ;;  %p170_p2 = scmp.eq.s32.totalorder %s2714_s25, 1 }
   0x9   : > { %p175_p3 = scmp.ne.s32.totalorder %s2634_s22, %s2630_s21  ;;  %p176_p4 = scmp.eq.s32.totalorder %s2297_s26, 1 }
   0xa   : > { %s2729_s30 = scalar_select %p157_p1, %s2638_s23, %s159_s28  }
   0xb   : > { %p2731_p5 = por %p170_p2, %p169_p0  ;;  %p2735_p6 = por %p176_p4, %p175_p3 }
   0xc   : > { %p2298_p7 = scmp.ge.s32.totalorder %s2642_s24, 1  ;;  %p183_p8 = scmp.lt.s32.totalorder %s2642_s24, 3 }
   0xd   : > { %s3572_s8 = scalar_select %p2735_p6, 1, 0 }
   0xe   : > { %p3565_p9 = scmp.eq.s32.totalorder %s2714_s25, 0  ;;  %p2742_p10 = pnand %p2298_p7, %p183_p8 }
   0xf   : > { %s2644_s10 = smov [#allocation3]   ;;  %s2645_s13 = smov [#allocation6]  }
  0x10   : > { %s195_s11 = sshll.u32 %s2644_s10, 4  ;;  %p2429_p11 = pneg %p2742_p10  ;;  %s196_s11 = int_to_ptr.vmem [resolvable:$true] %s195_s11 }
  0x11   : > { %s208_s14 = sshll.u32 %s2645_s13, 4  ;;  %s2533_s15 = scalar_lea.vmem %s196_s11, 32768  ;;  %s209_s14 = int_to_ptr.vmem [resolvable:$true] %s208_s14 }
  0x12   : > { %p2750_p12 = pnand %p3565_p9, %p2429_p11  ;;  %p2534_p0 = scmp.ne.s32.totalorder %s196_s11, %s2533_s15 }
  0x13   : > { %p2541_p3 = scmp.lt.s32.totalorder %s196_s11, %s196_s11  ;;  %p2542_p4 = scmp.lt.s32.totalorder %s2533_s15, %s2533_s15 }
  0x14   : > { %p2524_p13 = pneg %p2750_p12 }
  0x15   : > { %p2543_p7 = por %p2542_p4, %p2541_p3 }
  0x16   : > { %p2536_p1 = pnand %p2534_p0, %p2524_p13 }
  0x18   : > { %p2537_p2 = pneg %p2536_p1 }
  0x1a   : > { %p2544_p8 = pnand %p2543_p7, %p2537_p2 }
  0x1c   : > { %2547 = shalt.err (!%p2544_p8)
}
  0x1d   : > { %s2646_s16 = smov 1024   ;;  %s2647_s17 = smov 64  }
  0x1e   : > { %2432 = dma.hbm_to_vmem [thread:$0]  (!%p2750_p12), %s3559_s1, 32768, %s196_s11, [#allocation4], %s2646_s16, %s2646_s16, %s2647_s17  }
  0x1f   : > { %s2559_s20 = scalar_lea.vmem %s209_s14, 2048  ;;  %p2567_p9 = scmp.lt.s32.totalorder %s209_s14, %s209_s14 }
  0x20   : > { %p2560_p11 = scmp.ne.s32.totalorder %s209_s14, %s2559_s20  ;;  %p2568_p6 = scmp.lt.s32.totalorder %s2559_s20, %s2559_s20 }
  0x22   : > { %p2562_p0 = pnand %p2560_p11, %p2524_p13  ;;  %p2569_p3 = por %p2568_p6, %p2567_p9 }
  0x24   : > { %p2563_p1 = pneg %p2562_p0 }
  0x26   : > { %p2570_p2 = pnand %p2569_p3, %p2563_p1 }
  0x28   : > { %2573 = shalt.err (!%p2570_p2)
}
  0x29   : > { %2435 = dma.hbm_to_vmem [thread:$0]  (!%p2750_p12), %s3560_s2, 2048, %s209_s14, [#allocation7], %s2646_s16, %s2646_s16, %s2647_s17  }
  0x2a   : > { %241 = sbr.rel (%p2742_p10) target bundleno = 788 (0x314), region = 44 }
  0x2f   : > { %p3575_p4 = scmp.eq.s32.totalorder %s2714_s25, 0 }
  0x31   : > { %2617 = dma.done.wait (%p3575_p4), [#allocation4], 32768   ;;  %p3576_p13 = pmov %p3575_p4 }
  0x32   : > { %p3577_p7 = pmov %p3575_p4 }
  0x33   : > { %2619 = vsyncadd (%p3576_p13), [#allocation4], 4294934528 }
  0x34   : > { %2621 = dma.done.wait (%p3577_p7), [#allocation7], 2048   ;;  %p3578_p6 = pmov %p3575_p4 }
  0x35   : > { %v403_v0 = vld [vmem:[#allocation3 + $0x3c8] sm:$0xff]  ;;  %v405_v1 = vld [vmem:[#allocation3 + $0x3d8] sm:$0xff]  ;;  %v402_v2 = vld [vmem:[#allocation3 + $0x3c0] sm:$0xff]  ;;  %p275_p9 = scmp.lt.s32.totalorder %s2714_s25, 1  ;;  %s2648_s13 = smov 95   ;;  %vm1968_vm4 = vcmask 1041408  }
  0x36   : > { %2623 = vsyncadd (%p3578_p6), [#allocation7], 4294965248  ;;  %541 = vmatprep.subr.mxu0 %v403_v0  ;;  %612 = vmatprep.subr.mxu1 %v405_v1  ;;  %v404_v3 = vld [vmem:[#allocation3 + $0x3d0] sm:$0xff]  ;;  %v395_v4 = vld [vmem:[#allocation3 + $0x388] sm:$0xff]  ;;  %s2649_s14 = smov 127   ;;  %s2650_s15 = smov 96  }
  0x37   : > { %v397_v5 = vld [vmem:[#allocation3 + $0x398] sm:$0xff]  ;;  %542 = vmatpush1.msra.mxu0 %v402_v2  ;;  %613 = vmatpush1.msra.mxu1 %v404_v3  ;;  %v394_v6 = vld [vmem:[#allocation3 + $0x380] sm:$0xff]  ;;  %v396_v7 = vld [vmem:[#allocation3 + $0x390] sm:$0xff]  ;;  %s2786_s29 = scalar_select %p275_p9, %s2714_s25, 1  ;;  %vm1964_vm9 = vcmask 293888  }
  0x38   : > { %v387_v8 = vld [vmem:[#allocation3 + $0x348] sm:$0xff]  ;;  %543 = vmatprep.subr.mxu0 %v395_v4  ;;  %614 = vmatprep.subr.mxu1 %v397_v5  ;;  %v389_v9 = vld [vmem:[#allocation3 + $0x358] sm:$0xff]  ;;  %v386_v10 = vld [vmem:[#allocation3 + $0x340] sm:$0xff]  ;;  %s2651_s16 = smov 97   ;;  %s2652_s17 = smov 32  }
  0x39   : > { %v388_v11 = vld [vmem:[#allocation3 + $0x350] sm:$0xff]  ;;  %544 = vmatpush1.msra.mxu0 %v394_v6  ;;  %615 = vmatpush1.msra.mxu1 %v396_v7  ;;  %v379_v12 = vld [vmem:[#allocation3 + $0x308] sm:$0xff]  ;;  %v381_v13 = vld [vmem:[#allocation3 + $0x318] sm:$0xff]  ;;  %s2381_s9 = sshll.u32 %s2786_s29, 3  ;;  %s2653_s18 = smov 1  }
  0x3a   : > { %545 = vmatprep.subr.mxu0 %v387_v8  ;;  %616 = vmatprep.subr.mxu1 %v389_v9  ;;  %v378_v14 = vld [vmem:[#allocation3 + $0x300] sm:$0xff]  ;;  %v380_v15 = vld [vmem:[#allocation3 + $0x310] sm:$0xff]  ;;  %v371_v16 = vld [vmem:[#allocation3 + $0x2c8] sm:$0xff]  ;;  %s279_s12 = scalar_lea.vmem %s3558_s0, %s2381_s9  ;;  %s2654_s19 = smov 33  }
  0x3b   : > { %546 = vmatpush1.msra.mxu0 %v386_v10  ;;  %617 = vmatpush1.msra.mxu1 %v388_v11  ;;  %v373_v17 = vld [vmem:[#allocation3 + $0x2d8] sm:$0xff]  ;;  %v370_v18 = vld [vmem:[#allocation3 + $0x2c0] sm:$0xff]  ;;  %v372_v19 = vld [vmem:[#allocation3 + $0x2d0] sm:$0xff]  ;;  %s2655_s20 = smov 31   ;;  %s2657_s26 = smov [#allocation8]  }
  0x3c   : > { %547 = vmatprep.subr.mxu0 %v379_v12  ;;  %618 = vmatprep.subr.mxu1 %v381_v13  ;;  %v363_v20 = vld [vmem:[#allocation3 + $0x288] sm:$0xff]  ;;  %v365_v21 = vld [vmem:[#allocation3 + $0x298] sm:$0xff]  ;;  %v362_v22 = vld [vmem:[#allocation3 + $0x280] sm:$0xff]  ;;  %s2578_s28 = sshll.u32 %s2657_s26, 4  ;;  %s2579_s28 = int_to_ptr.vmem [resolvable:$false] %s2578_s28 }
  0x3d   : > { %548 = vmatpush1.msra.mxu0 %v378_v14  ;;  %619 = vmatpush1.msra.mxu1 %v380_v15  ;;  %v364_v23 = vld [vmem:[#allocation3 + $0x290] sm:$0xff]  ;;  %v355_v24 = vld [vmem:[#allocation3 + $0x248] sm:$0xff]  ;;  %v357_v25 = vld [vmem:[#allocation3 + $0x258] sm:$0xff]  ;;  %s2580_s29 = scalar_lea.vmem %s2579_s28, 2048 }
  0x3e   : > { %549 = vmatprep.subr.mxu0 %v371_v16  ;;  %620 = vmatprep.subr.mxu1 %v373_v17  ;;  %v354_v26 = vld [vmem:[#allocation3 + $0x240] sm:$0xff]  ;;  %v356_v27 = vld [vmem:[#allocation3 + $0x250] sm:$0xff]  ;;  %v347_v28 = vld [vmem:[#allocation3 + $0x208] sm:$0xff] }
  0x3f   : > { %550 = vmatpush1.msra.mxu0 %v370_v18  ;;  %621 = vmatpush1.msra.mxu1 %v372_v19  ;;  %v349_v29 = vld [vmem:[#allocation3 + $0x218] sm:$0xff]  ;;  %v346_v30 = vld [vmem:[#allocation3 + $0x200] sm:$0xff]  ;;  %v348_v31 = vld [vmem:[#allocation3 + $0x210] sm:$0xff] }
  0x40   : > { %551 = vmatprep.subr.mxu0 %v363_v20  ;;  %622 = vmatprep.subr.mxu1 %v365_v21  ;;  %v339_v32 = vld [vmem:[#allocation3 + $0x1c8] sm:$0xff]  ;;  %v341_v33 = vld [vmem:[#allocation3 + $0x1d8] sm:$0xff]  ;;  %v338_v34 = vld [vmem:[#allocation3 + $0x1c0] sm:$0xff] }
  0x41   : > { %552 = vmatpush1.msra.mxu0 %v362_v22  ;;  %623 = vmatpush1.msra.mxu1 %v364_v23  ;;  %v340_v35 = vld [vmem:[#allocation3 + $0x1d0] sm:$0xff]  ;;  %v331_v36 = vld [vmem:[#allocation3 + $0x188] sm:$0xff]  ;;  %v333_v37 = vld [vmem:[#allocation3 + $0x198] sm:$0xff] }
  0x42   : > { %553 = vmatprep.subr.mxu0 %v355_v24  ;;  %624 = vmatprep.subr.mxu1 %v357_v25  ;;  %v330_v38 = vld [vmem:[#allocation3 + $0x180] sm:$0xff]  ;;  %v332_v39 = vld [vmem:[#allocation3 + $0x190] sm:$0xff]  ;;  %v323_v40 = vld [vmem:[#allocation3 + $0x148] sm:$0xff] }
  0x43   : > { %554 = vmatpush1.msra.mxu0 %v354_v26  ;;  %625 = vmatpush1.msra.mxu1 %v356_v27  ;;  %v325_v41 = vld [vmem:[#allocation3 + $0x158] sm:$0xff]  ;;  %v322_v42 = vld [vmem:[#allocation3 + $0x140] sm:$0xff]  ;;  %v324_v43 = vld [vmem:[#allocation3 + $0x150] sm:$0xff] }
  0x44   : > { %555 = vmatprep.subr.mxu0 %v347_v28  ;;  %626 = vmatprep.subr.mxu1 %v349_v29  ;;  %v315_v44 = vld [vmem:[#allocation3 + $0x108] sm:$0xff]  ;;  %v317_v45 = vld [vmem:[#allocation3 + $0x118] sm:$0xff]  ;;  %v314_v46 = vld [vmem:[#allocation3 + $0x100] sm:$0xff] }
  0x45   : > { %556 = vmatpush1.msra.mxu0 %v346_v30  ;;  %627 = vmatpush1.msra.mxu1 %v348_v31  ;;  %v316_v47 = vld [vmem:[#allocation3 + $0x110] sm:$0xff]  ;;  %v307_v48 = vld [vmem:[#allocation3 + $0xc8] sm:$0xff]  ;;  %v309_v49 = vld [vmem:[#allocation3 + $0xd8] sm:$0xff] }
  0x46   : > { %557 = vmatprep.subr.mxu0 %v339_v32  ;;  %628 = vmatprep.subr.mxu1 %v341_v33  ;;  %v306_v50 = vld [vmem:[#allocation3 + $0xc0] sm:$0xff]  ;;  %v308_v51 = vld [vmem:[#allocation3 + $0xd0] sm:$0xff]  ;;  %v299_v52 = vld [vmem:[#allocation3 + $0x88] sm:$0xff] }
  0x47   : > { %558 = vmatpush1.msra.mxu0 %v338_v34  ;;  %629 = vmatpush1.msra.mxu1 %v340_v35  ;;  %v301_v53 = vld [vmem:[#allocation3 + $0x98] sm:$0xff]  ;;  %v298_v54 = vld [vmem:[#allocation3 + $0x80] sm:$0xff]  ;;  %v300_v55 = vld [vmem:[#allocation3 + $0x90] sm:$0xff] }
  0x48   : > { %559 = vmatprep.subr.mxu0 %v331_v36  ;;  %630 = vmatprep.subr.mxu1 %v333_v37  ;;  %v291_v56 = vld [vmem:[#allocation3 + $0x48] sm:$0xff]  ;;  %v293_v57 = vld [vmem:[#allocation3 + $0x58] sm:$0xff]  ;;  %v290_v58 = vld [vmem:[#allocation3 + $0x40] sm:$0xff] }
  0x49   : > { %560 = vmatpush1.msra.mxu0 %v330_v38  ;;  %631 = vmatpush1.msra.mxu1 %v332_v39  ;;  %v292_v59 = vld [vmem:[#allocation3 + $0x50] sm:$0xff]  ;;  %v283_v60 = vld [vmem:[#allocation3 + $0x8] sm:$0xff]  ;;  %v285_v61 = vld [vmem:[#allocation3 + $0x18] sm:$0xff] }
  0x4a   : > { %561 = vmatprep.subr.mxu0 %v323_v40  ;;  %632 = vmatprep.subr.mxu1 %v325_v41  ;;  %v282_v62 = vld [vmem:[#allocation3] sm:$0xff]  ;;  %v284_v63 = vld [vmem:[#allocation3 + $0x10] sm:$0xff]  ;;  %v531_v0 = vld [vmem:[#allocation3 + $0x7c8] sm:$0xff] }
  0x4b   : > { %562 = vmatpush1.msra.mxu0 %v322_v42  ;;  %633 = vmatpush1.msra.mxu1 %v324_v43  ;;  %v533_v1 = vld [vmem:[#allocation3 + $0x7d8] sm:$0xff]  ;;  %v530_v2 = vld [vmem:[#allocation3 + $0x7c0] sm:$0xff]  ;;  %v532_v3 = vld [vmem:[#allocation3 + $0x7d0] sm:$0xff] }
  0x4c   : > { %563 = vmatprep.subr.mxu0 %v315_v44  ;;  %634 = vmatprep.subr.mxu1 %v317_v45  ;;  %v523_v4 = vld [vmem:[#allocation3 + $0x788] sm:$0xff]  ;;  %v525_v5 = vld [vmem:[#allocation3 + $0x798] sm:$0xff]  ;;  %v522_v6 = vld [vmem:[#allocation3 + $0x780] sm:$0xff] }
  0x4d   : > { %564 = vmatpush1.msra.mxu0 %v314_v46  ;;  %635 = vmatpush1.msra.mxu1 %v316_v47  ;;  %v524_v7 = vld [vmem:[#allocation3 + $0x790] sm:$0xff]  ;;  %v515_v8 = vld [vmem:[#allocation3 + $0x748] sm:$0xff]  ;;  %v517_v9 = vld [vmem:[#allocation3 + $0x758] sm:$0xff] }
  0x4e   : > { %565 = vmatprep.subr.mxu0 %v307_v48  ;;  %636 = vmatprep.subr.mxu1 %v309_v49  ;;  %v514_v10 = vld [vmem:[#allocation3 + $0x740] sm:$0xff]  ;;  %v516_v11 = vld [vmem:[#allocation3 + $0x750] sm:$0xff]  ;;  %v507_v12 = vld [vmem:[#allocation3 + $0x708] sm:$0xff] }
  0x4f   : > { %566 = vmatpush1.msra.mxu0 %v306_v50  ;;  %637 = vmatpush1.msra.mxu1 %v308_v51  ;;  %v509_v13 = vld [vmem:[#allocation3 + $0x718] sm:$0xff]  ;;  %v506_v14 = vld [vmem:[#allocation3 + $0x700] sm:$0xff]  ;;  %v508_v15 = vld [vmem:[#allocation3 + $0x710] sm:$0xff] }
  0x50   : > { %567 = vmatprep.subr.mxu0 %v299_v52  ;;  %638 = vmatprep.subr.mxu1 %v301_v53  ;;  %v499_v16 = vld [vmem:[#allocation3 + $0x6c8] sm:$0xff]  ;;  %v501_v17 = vld [vmem:[#allocation3 + $0x6d8] sm:$0xff]  ;;  %v498_v18 = vld [vmem:[#allocation3 + $0x6c0] sm:$0xff] }
  0x51   : > { %568 = vmatpush1.msra.mxu0 %v298_v54  ;;  %639 = vmatpush1.msra.mxu1 %v300_v55  ;;  %v500_v19 = vld [vmem:[#allocation3 + $0x6d0] sm:$0xff]  ;;  %v491_v20 = vld [vmem:[#allocation3 + $0x688] sm:$0xff]  ;;  %v493_v21 = vld [vmem:[#allocation3 + $0x698] sm:$0xff] }
  0x52   : > { %569 = vmatprep.subr.mxu0 %v291_v56  ;;  %640 = vmatprep.subr.mxu1 %v293_v57  ;;  %v490_v22 = vld [vmem:[#allocation3 + $0x680] sm:$0xff]  ;;  %v492_v23 = vld [vmem:[#allocation3 + $0x690] sm:$0xff]  ;;  %v483_v24 = vld [vmem:[#allocation3 + $0x648] sm:$0xff] }
  0x53   : > { %570 = vmatpush1.msra.mxu0 %v290_v58  ;;  %641 = vmatpush1.msra.mxu1 %v292_v59  ;;  %v485_v25 = vld [vmem:[#allocation3 + $0x658] sm:$0xff]  ;;  %v482_v26 = vld [vmem:[#allocation3 + $0x640] sm:$0xff]  ;;  %v484_v27 = vld [vmem:[#allocation3 + $0x650] sm:$0xff] }
  0x54   : > { %571 = vmatprep.subr.mxu0 %v283_v60  ;;  %642 = vmatprep.subr.mxu1 %v285_v61  ;;  %v475_v28 = vld [vmem:[#allocation3 + $0x608] sm:$0xff]  ;;  %v477_v29 = vld [vmem:[#allocation3 + $0x618] sm:$0xff]  ;;  %v474_v30 = vld [vmem:[#allocation3 + $0x600] sm:$0xff] }
  0x55   : > { %572 = vmatpush1.msra.mxu0 %v282_v62  ;;  %643 = vmatpush1.msra.mxu1 %v284_v63  ;;  %v476_v31 = vld [vmem:[#allocation3 + $0x610] sm:$0xff]  ;;  %v467_v32 = vld [vmem:[#allocation3 + $0x5c8] sm:$0xff]  ;;  %v469_v33 = vld [vmem:[#allocation3 + $0x5d8] sm:$0xff] }
  0x56   : > { %573 = vmatprep.subr.mxu0 %v531_v0  ;;  %644 = vmatprep.subr.mxu1 %v533_v1  ;;  %v466_v34 = vld [vmem:[#allocation3 + $0x5c0] sm:$0xff]  ;;  %v468_v35 = vld [vmem:[#allocation3 + $0x5d0] sm:$0xff]  ;;  %v459_v36 = vld [vmem:[#allocation3 + $0x588] sm:$0xff] }
  0x57   : > { %574 = vmatpush2.msra.mxu0 %v530_v2  ;;  %645 = vmatpush2.msra.mxu1 %v532_v3  ;;  %v461_v37 = vld [vmem:[#allocation3 + $0x598] sm:$0xff]  ;;  %v458_v38 = vld [vmem:[#allocation3 + $0x580] sm:$0xff]  ;;  %v460_v39 = vld [vmem:[#allocation3 + $0x590] sm:$0xff] }
  0x58   : > { %575 = vmatprep.subr.mxu0 %v523_v4  ;;  %646 = vmatprep.subr.mxu1 %v525_v5  ;;  %v451_v40 = vld [vmem:[#allocation3 + $0x548] sm:$0xff]  ;;  %v453_v41 = vld [vmem:[#allocation3 + $0x558] sm:$0xff]  ;;  %v450_v42 = vld [vmem:[#allocation3 + $0x540] sm:$0xff] }
  0x59   : > { %576 = vmatpush2.msra.mxu0 %v522_v6  ;;  %647 = vmatpush2.msra.mxu1 %v524_v7  ;;  %v452_v43 = vld [vmem:[#allocation3 + $0x550] sm:$0xff]  ;;  %v443_v44 = vld [vmem:[#allocation3 + $0x508] sm:$0xff]  ;;  %v445_v45 = vld [vmem:[#allocation3 + $0x518] sm:$0xff] }
  0x5a   : > { %577 = vmatprep.subr.mxu0 %v515_v8  ;;  %648 = vmatprep.subr.mxu1 %v517_v9  ;;  %v442_v46 = vld [vmem:[#allocation3 + $0x500] sm:$0xff]  ;;  %v444_v47 = vld [vmem:[#allocation3 + $0x510] sm:$0xff]  ;;  %v435_v48 = vld [vmem:[#allocation3 + $0x4c8] sm:$0xff] }
  0x5b   : > { %578 = vmatpush2.msra.mxu0 %v514_v10  ;;  %649 = vmatpush2.msra.mxu1 %v516_v11  ;;  %v437_v49 = vld [vmem:[#allocation3 + $0x4d8] sm:$0xff]  ;;  %v434_v50 = vld [vmem:[#allocation3 + $0x4c0] sm:$0xff]  ;;  %v436_v51 = vld [vmem:[#allocation3 + $0x4d0] sm:$0xff] }
  0x5c   : > { %579 = vmatprep.subr.mxu0 %v507_v12  ;;  %650 = vmatprep.subr.mxu1 %v509_v13  ;;  %v427_v52 = vld [vmem:[#allocation3 + $0x488] sm:$0xff]  ;;  %v429_v53 = vld [vmem:[#allocation3 + $0x498] sm:$0xff]  ;;  %v426_v54 = vld [vmem:[#allocation3 + $0x480] sm:$0xff] }
  0x5d   : > { %580 = vmatpush2.msra.mxu0 %v506_v14  ;;  %651 = vmatpush2.msra.mxu1 %v508_v15  ;;  %v428_v55 = vld [vmem:[#allocation3 + $0x490] sm:$0xff]  ;;  %v2792_v56 = vld [vmem:[%s279_s12] sm:$0xff]  ;;  %v419_v57 = vld [vmem:[#allocation3 + $0x448] sm:$0xff]  ;;  %s272_s12 = sand.u32 1, %s2634_s22  }
  0x5e   : > { %581 = vmatprep.subr.mxu0 %v499_v16  ;;  %652 = vmatprep.subr.mxu1 %v501_v17  ;;  %v421_v58 = vld [vmem:[#allocation3 + $0x458] sm:$0xff]  ;;  %v418_v59 = vld [vmem:[#allocation3 + $0x440] sm:$0xff]  ;;  %v420_v60 = vld [vmem:[#allocation3 + $0x450] sm:$0xff]  ;;  %v2796_v63 = vcombine.high %v2792_v56, %v2792_v56 }
  0x5f   : > { %582 = vmatpush2.msra.mxu0 %v498_v18  ;;  %653 = vmatpush2.msra.mxu1 %v500_v19  ;;  %v411_v61 = vld [vmem:[#allocation3 + $0x408] sm:$0xff]  ;;  %v413_v62 = vld [vmem:[#allocation3 + $0x418] sm:$0xff]  ;;  %v410_v0 = vld [vmem:[#allocation3 + $0x400] sm:$0xff] }
  0x60   : > { %583 = vmatprep.subr.mxu0 %v491_v20  ;;  %654 = vmatprep.subr.mxu1 %v493_v21  ;;  %v412_v1 = vld [vmem:[#allocation3 + $0x410] sm:$0xff]  ;;  %v407_v2 = vld [vmem:[#allocation3 + $0x3e8] sm:$0xff]  ;;  %v409_v3 = vld [vmem:[#allocation3 + $0x3f8] sm:$0xff] }
  0x61   : > { %584 = vmatpush2.msra.mxu0 %v490_v22  ;;  %655 = vmatpush2.msra.mxu1 %v492_v23  ;;  %v406_v4 = vld [vmem:[#allocation3 + $0x3e0] sm:$0xff]  ;;  %v408_v5 = vld [vmem:[#allocation3 + $0x3f0] sm:$0xff]  ;;  %v399_v6 = vld [vmem:[#allocation3 + $0x3a8] sm:$0xff] }
  0x62   : > { %585 = vmatprep.subr.mxu0 %v483_v24  ;;  %656 = vmatprep.subr.mxu1 %v485_v25  ;;  %v401_v7 = vld [vmem:[#allocation3 + $0x3b8] sm:$0xff]  ;;  %v398_v8 = vld [vmem:[#allocation3 + $0x3a0] sm:$0xff]  ;;  %v400_v9 = vld [vmem:[#allocation3 + $0x3b0] sm:$0xff] }
  0x63   : > { %586 = vmatpush2.msra.mxu0 %v482_v26  ;;  %657 = vmatpush2.msra.mxu1 %v484_v27  ;;  %v391_v10 = vld [vmem:[#allocation3 + $0x368] sm:$0xff]  ;;  %v393_v11 = vld [vmem:[#allocation3 + $0x378] sm:$0xff]  ;;  %v390_v12 = vld [vmem:[#allocation3 + $0x360] sm:$0xff] }
  0x64   : > { %587 = vmatprep.subr.mxu0 %v475_v28  ;;  %658 = vmatprep.subr.mxu1 %v477_v29  ;;  %v392_v13 = vld [vmem:[#allocation3 + $0x370] sm:$0xff]  ;;  %v383_v14 = vld [vmem:[#allocation3 + $0x328] sm:$0xff]  ;;  %v385_v15 = vld [vmem:[#allocation3 + $0x338] sm:$0xff] }
  0x65   : > { %588 = vmatpush2.msra.mxu0 %v474_v30  ;;  %659 = vmatpush2.msra.mxu1 %v476_v31  ;;  %v382_v16 = vld [vmem:[#allocation3 + $0x320] sm:$0xff]  ;;  %v384_v17 = vld [vmem:[#allocation3 + $0x330] sm:$0xff]  ;;  %v375_v18 = vld [vmem:[#allocation3 + $0x2e8] sm:$0xff] }
  0x66   : > { %589 = vmatprep.subr.mxu0 %v467_v32  ;;  %660 = vmatprep.subr.mxu1 %v469_v33  ;;  %v377_v19 = vld [vmem:[#allocation3 + $0x2f8] sm:$0xff]  ;;  %v374_v20 = vld [vmem:[#allocation3 + $0x2e0] sm:$0xff]  ;;  %v376_v21 = vld [vmem:[#allocation3 + $0x2f0] sm:$0xff] }
  0x67   : > { %590 = vmatpush2.msra.mxu0 %v466_v34  ;;  %661 = vmatpush2.msra.mxu1 %v468_v35  ;;  %v367_v22 = vld [vmem:[#allocation3 + $0x2a8] sm:$0xff]  ;;  %v369_v23 = vld [vmem:[#allocation3 + $0x2b8] sm:$0xff]  ;;  %v366_v24 = vld [vmem:[#allocation3 + $0x2a0] sm:$0xff] }
  0x68   : > { %591 = vmatprep.subr.mxu0 %v459_v36  ;;  %662 = vmatprep.subr.mxu1 %v461_v37  ;;  %v368_v25 = vld [vmem:[#allocation3 + $0x2b0] sm:$0xff]  ;;  %v359_v26 = vld [vmem:[#allocation3 + $0x268] sm:$0xff]  ;;  %v361_v27 = vld [vmem:[#allocation3 + $0x278] sm:$0xff] }
  0x69   : > { %592 = vmatpush2.msra.mxu0 %v458_v38  ;;  %663 = vmatpush2.msra.mxu1 %v460_v39  ;;  %v358_v28 = vld [vmem:[#allocation3 + $0x260] sm:$0xff]  ;;  %v360_v29 = vld [vmem:[#allocation3 + $0x270] sm:$0xff]  ;;  %v351_v30 = vld [vmem:[#allocation3 + $0x228] sm:$0xff] }
  0x6a   : > { %593 = vmatprep.subr.mxu0 %v451_v40  ;;  %664 = vmatprep.subr.mxu1 %v453_v41  ;;  %v353_v31 = vld [vmem:[#allocation3 + $0x238] sm:$0xff]  ;;  %v350_v32 = vld [vmem:[#allocation3 + $0x220] sm:$0xff]  ;;  %v352_v33 = vld [vmem:[#allocation3 + $0x230] sm:$0xff] }
  0x6b   : > { %594 = vmatpush2.msra.mxu0 %v450_v42  ;;  %665 = vmatpush2.msra.mxu1 %v452_v43  ;;  %v343_v34 = vld [vmem:[#allocation3 + $0x1e8] sm:$0xff]  ;;  %v345_v35 = vld [vmem:[#allocation3 + $0x1f8] sm:$0xff]  ;;  %v342_v36 = vld [vmem:[#allocation3 + $0x1e0] sm:$0xff] }
  0x6c   : > { %595 = vmatprep.subr.mxu0 %v443_v44  ;;  %666 = vmatprep.subr.mxu1 %v445_v45  ;;  %v344_v37 = vld [vmem:[#allocation3 + $0x1f0] sm:$0xff]  ;;  %v335_v38 = vld [vmem:[#allocation3 + $0x1a8] sm:$0xff]  ;;  %v337_v39 = vld [vmem:[#allocation3 + $0x1b8] sm:$0xff] }
  0x6d   : > { %596 = vmatpush2.msra.mxu0 %v442_v46  ;;  %667 = vmatpush2.msra.mxu1 %v444_v47  ;;  %v334_v40 = vld [vmem:[#allocation3 + $0x1a0] sm:$0xff]  ;;  %v336_v41 = vld [vmem:[#allocation3 + $0x1b0] sm:$0xff]  ;;  %v327_v42 = vld [vmem:[#allocation3 + $0x168] sm:$0xff] }
  0x6e   : > { %597 = vmatprep.subr.mxu0 %v435_v48  ;;  %668 = vmatprep.subr.mxu1 %v437_v49  ;;  %v329_v43 = vld [vmem:[#allocation3 + $0x178] sm:$0xff]  ;;  %v326_v44 = vld [vmem:[#allocation3 + $0x160] sm:$0xff]  ;;  %v328_v45 = vld [vmem:[#allocation3 + $0x170] sm:$0xff] }
  0x6f   : > { %598 = vmatpush2.msra.mxu0 %v434_v50  ;;  %669 = vmatpush2.msra.mxu1 %v436_v51  ;;  %v319_v46 = vld [vmem:[#allocation3 + $0x128] sm:$0xff]  ;;  %v321_v47 = vld [vmem:[#allocation3 + $0x138] sm:$0xff]  ;;  %v318_v48 = vld [vmem:[#allocation3 + $0x120] sm:$0xff] }
  0x70   : > { %599 = vmatprep.subr.mxu0 %v427_v52  ;;  %670 = vmatprep.subr.mxu1 %v429_v53  ;;  %v320_v49 = vld [vmem:[#allocation3 + $0x130] sm:$0xff]  ;;  %v311_v50 = vld [vmem:[#allocation3 + $0xe8] sm:$0xff]  ;;  %v313_v51 = vld [vmem:[#allocation3 + $0xf8] sm:$0xff] }
  0x71   : > { %600 = vmatpush2.msra.mxu0 %v426_v54  ;;  %671 = vmatpush2.msra.mxu1 %v428_v55  ;;  %v310_v52 = vld [vmem:[#allocation3 + $0xe0] sm:$0xff]  ;;  %v312_v53 = vld [vmem:[#allocation3 + $0xf0] sm:$0xff]  ;;  %v303_v54 = vld [vmem:[#allocation3 + $0xa8] sm:$0xff] }
  0x72   : > { %601 = vmatprep.subr.mxu0 %v419_v57  ;;  %672 = vmatprep.subr.mxu1 %v421_v58  ;;  %v305_v55 = vld [vmem:[#allocation3 + $0xb8] sm:$0xff]  ;;  %v302_v57 = vld [vmem:[#allocation3 + $0xa0] sm:$0xff]  ;;  %v304_v58 = vld [vmem:[#allocation3 + $0xb0] sm:$0xff] }
  0x73   : > { %602 = vmatpush2.msra.mxu0 %v418_v59  ;;  %673 = vmatpush2.msra.mxu1 %v420_v60  ;;  %v295_v59 = vld [vmem:[#allocation3 + $0x68] sm:$0xff]  ;;  %v297_v60 = vld [vmem:[#allocation3 + $0x78] sm:$0xff] }
  0x74   : > { %603 = vmatprep.subr.mxu0 %v411_v61  ;;  %674 = vmatprep.subr.mxu1 %v413_v62  ;;  %v294_v61 = vld [vmem:[#allocation3 + $0x60] sm:$0xff]  ;;  %v296_v62 = vld [vmem:[#allocation3 + $0x70] sm:$0xff] }
  0x75   : > { %604 = vmatpush2.msra.mxu0 %v410_v0  ;;  %605 = vmatprep.mubr.f32.mxu0 %v2796_v63  ;;  %v287_v0 = vld [vmem:[#allocation3 + $0x28] sm:$0xff] }
  0x76   : > { %675 = vmatpush2.msra.mxu1 %v412_v1  ;;  %676 = vmatprep.mubr.f32.mxu1 %v2796_v63  ;;  %v289_v1 = vld [vmem:[#allocation3 + $0x38] sm:$0xff] }
  0x77   : > { %606 = vmatmul.mubr.f32.vlgmr.msra.gmra.mxu0 %v2792_v56  ;;  %677 = vmatmul.mubr.f32.vlgmr.msra.gmra.mxu1 %v2792_v56 }
  0x78   : > { %683 = vmatprep.subr.mxu0 %v407_v2  ;;  %754 = vmatprep.subr.mxu1 %v409_v3  ;;  %v286_v2 = vld [vmem:[#allocation3 + $0x20] sm:$0xff]  ;;  %v288_v3 = vld [vmem:[#allocation3 + $0x30] sm:$0xff] }
  0x79   : > { %684 = vmatpush1.msra.mxu0 %v406_v4  ;;  %755 = vmatpush1.msra.mxu1 %v408_v5  ;;  %v535_v4 = vld [vmem:[#allocation3 + $0x7e8] sm:$0xff]  ;;  %v537_v5 = vld [vmem:[#allocation3 + $0x7f8] sm:$0xff] }
  0x7a   : > { %685 = vmatprep.subr.mxu0 %v399_v6  ;;  %756 = vmatprep.subr.mxu1 %v401_v7  ;;  %v534_v6 = vld [vmem:[#allocation3 + $0x7e0] sm:$0xff]  ;;  %v536_v7 = vld [vmem:[#allocation3 + $0x7f0] sm:$0xff] }
  0x7b   : > { %686 = vmatpush1.msra.mxu0 %v398_v8  ;;  %757 = vmatpush1.msra.mxu1 %v400_v9  ;;  %v527_v8 = vld [vmem:[#allocation3 + $0x7a8] sm:$0xff]  ;;  %v529_v9 = vld [vmem:[#allocation3 + $0x7b8] sm:$0xff] }
  0x7c   : > { %687 = vmatprep.subr.mxu0 %v391_v10  ;;  %758 = vmatprep.subr.mxu1 %v393_v11  ;;  %v526_v10 = vld [vmem:[#allocation3 + $0x7a0] sm:$0xff]  ;;  %v528_v11 = vld [vmem:[#allocation3 + $0x7b0] sm:$0xff] }
  0x7d   : > { %688 = vmatpush1.msra.mxu0 %v390_v12  ;;  %759 = vmatpush1.msra.mxu1 %v392_v13  ;;  %v519_v12 = vld [vmem:[#allocation3 + $0x768] sm:$0xff]  ;;  %v521_v13 = vld [vmem:[#allocation3 + $0x778] sm:$0xff] }
  0x7e   : > { %689 = vmatprep.subr.mxu0 %v383_v14  ;;  %760 = vmatprep.subr.mxu1 %v385_v15  ;;  %v518_v14 = vld [vmem:[#allocation3 + $0x760] sm:$0xff]  ;;  %v520_v15 = vld [vmem:[#allocation3 + $0x770] sm:$0xff] }
  0x7f   : > { %690 = vmatpush1.msra.mxu0 %v382_v16  ;;  %761 = vmatpush1.msra.mxu1 %v384_v17  ;;  %v511_v16 = vld [vmem:[#allocation3 + $0x728] sm:$0xff]  ;;  %v513_v17 = vld [vmem:[#allocation3 + $0x738] sm:$0xff] }
  0x80   : > { %691 = vmatprep.subr.mxu0 %v375_v18  ;;  %762 = vmatprep.subr.mxu1 %v377_v19  ;;  %v510_v18 = vld [vmem:[#allocation3 + $0x720] sm:$0xff]  ;;  %v512_v19 = vld [vmem:[#allocation3 + $0x730] sm:$0xff] }
  0x81   : > { %692 = vmatpush1.msra.mxu0 %v374_v20  ;;  %763 = vmatpush1.msra.mxu1 %v376_v21  ;;  %v503_v20 = vld [vmem:[#allocation3 + $0x6e8] sm:$0xff]  ;;  %v505_v21 = vld [vmem:[#allocation3 + $0x6f8] sm:$0xff] }
  0x82   : > { %693 = vmatprep.subr.mxu0 %v367_v22  ;;  %764 = vmatprep.subr.mxu1 %v369_v23  ;;  %v502_v22 = vld [vmem:[#allocation3 + $0x6e0] sm:$0xff]  ;;  %v504_v23 = vld [vmem:[#allocation3 + $0x6f0] sm:$0xff] }
  0x83   : > { %694 = vmatpush1.msra.mxu0 %v366_v24  ;;  %765 = vmatpush1.msra.mxu1 %v368_v25  ;;  %v495_v24 = vld [vmem:[#allocation3 + $0x6a8] sm:$0xff]  ;;  %v497_v25 = vld [vmem:[#allocation3 + $0x6b8] sm:$0xff] }
  0x84   : > { %695 = vmatprep.subr.mxu0 %v359_v26  ;;  %766 = vmatprep.subr.mxu1 %v361_v27  ;;  %v494_v26 = vld [vmem:[#allocation3 + $0x6a0] sm:$0xff]  ;;  %v496_v27 = vld [vmem:[#allocation3 + $0x6b0] sm:$0xff] }
  0x85   : > { %696 = vmatpush1.msra.mxu0 %v358_v28  ;;  %767 = vmatpush1.msra.mxu1 %v360_v29  ;;  %v487_v28 = vld [vmem:[#allocation3 + $0x668] sm:$0xff]  ;;  %v489_v29 = vld [vmem:[#allocation3 + $0x678] sm:$0xff] }
  0x86   : > { %697 = vmatprep.subr.mxu0 %v351_v30  ;;  %768 = vmatprep.subr.mxu1 %v353_v31  ;;  %v486_v30 = vld [vmem:[#allocation3 + $0x660] sm:$0xff]  ;;  %v488_v31 = vld [vmem:[#allocation3 + $0x670] sm:$0xff] }
  0x87   : > { %698 = vmatpush1.msra.mxu0 %v350_v32  ;;  %769 = vmatpush1.msra.mxu1 %v352_v33  ;;  %v479_v32 = vld [vmem:[#allocation3 + $0x628] sm:$0xff]  ;;  %v481_v33 = vld [vmem:[#allocation3 + $0x638] sm:$0xff] }
  0x88   : > { %699 = vmatprep.subr.mxu0 %v343_v34  ;;  %770 = vmatprep.subr.mxu1 %v345_v35  ;;  %v478_v34 = vld [vmem:[#allocation3 + $0x620] sm:$0xff]  ;;  %v480_v35 = vld [vmem:[#allocation3 + $0x630] sm:$0xff] }
  0x89   : > { %700 = vmatpush1.msra.mxu0 %v342_v36  ;;  %771 = vmatpush1.msra.mxu1 %v344_v37  ;;  %v471_v36 = vld [vmem:[#allocation3 + $0x5e8] sm:$0xff]  ;;  %v473_v37 = vld [vmem:[#allocation3 + $0x5f8] sm:$0xff] }
  0x8a   : > { %701 = vmatprep.subr.mxu0 %v335_v38  ;;  %772 = vmatprep.subr.mxu1 %v337_v39  ;;  %v470_v38 = vld [vmem:[#allocation3 + $0x5e0] sm:$0xff]  ;;  %v472_v39 = vld [vmem:[#allocation3 + $0x5f0] sm:$0xff] }
  0x8b   : > { %702 = vmatpush1.msra.mxu0 %v334_v40  ;;  %773 = vmatpush1.msra.mxu1 %v336_v41  ;;  %v463_v40 = vld [vmem:[#allocation3 + $0x5a8] sm:$0xff]  ;;  %v465_v41 = vld [vmem:[#allocation3 + $0x5b8] sm:$0xff] }
  0x8c   : > { %703 = vmatprep.subr.mxu0 %v327_v42  ;;  %774 = vmatprep.subr.mxu1 %v329_v43  ;;  %v462_v42 = vld [vmem:[#allocation3 + $0x5a0] sm:$0xff]  ;;  %v464_v43 = vld [vmem:[#allocation3 + $0x5b0] sm:$0xff] }
  0x8d   : > { %704 = vmatpush1.msra.mxu0 %v326_v44  ;;  %775 = vmatpush1.msra.mxu1 %v328_v45  ;;  %v455_v44 = vld [vmem:[#allocation3 + $0x568] sm:$0xff]  ;;  %v457_v45 = vld [vmem:[#allocation3 + $0x578] sm:$0xff] }
  0x8e   : > { %705 = vmatprep.subr.mxu0 %v319_v46  ;;  %776 = vmatprep.subr.mxu1 %v321_v47  ;;  %v454_v46 = vld [vmem:[#allocation3 + $0x560] sm:$0xff]  ;;  %v456_v47 = vld [vmem:[#allocation3 + $0x570] sm:$0xff] }
  0x8f   : > { %706 = vmatpush1.msra.mxu0 %v318_v48  ;;  %777 = vmatpush1.msra.mxu1 %v320_v49  ;;  %v447_v48 = vld [vmem:[#allocation3 + $0x528] sm:$0xff]  ;;  %v449_v49 = vld [vmem:[#allocation3 + $0x538] sm:$0xff] }
  0x90   : > { %707 = vmatprep.subr.mxu0 %v311_v50  ;;  %778 = vmatprep.subr.mxu1 %v313_v51  ;;  %v446_v50 = vld [vmem:[#allocation3 + $0x520] sm:$0xff]  ;;  %v448_v51 = vld [vmem:[#allocation3 + $0x530] sm:$0xff] }
  0x91   : > { %708 = vmatpush1.msra.mxu0 %v310_v52  ;;  %779 = vmatpush1.msra.mxu1 %v312_v53  ;;  %v439_v52 = vld [vmem:[#allocation3 + $0x4e8] sm:$0xff]  ;;  %v441_v53 = vld [vmem:[#allocation3 + $0x4f8] sm:$0xff] }
  0x92   : > { %709 = vmatprep.subr.mxu0 %v303_v54  ;;  %780 = vmatprep.subr.mxu1 %v305_v55  ;;  %v438_v54 = vld [vmem:[#allocation3 + $0x4e0] sm:$0xff]  ;;  %v431_v55 = vld [vmem:[#allocation3 + $0x4a8] sm:$0xff] }
  0x93   : > { %710 = vmatpush1.msra.mxu0 %v302_v57  ;;  %781 = vmatpush1.msra.mxu1 %v304_v58  ;;  %v440_v57 = vld [vmem:[#allocation3 + $0x4f0] sm:$0xff]  ;;  %v430_v58 = vld [vmem:[#allocation3 + $0x4a0] sm:$0xff] }
  0x94   : > { %711 = vmatprep.subr.mxu0 %v295_v59  ;;  %782 = vmatprep.subr.mxu1 %v297_v60  ;;  %v433_v59 = vld [vmem:[#allocation3 + $0x4b8] sm:$0xff]  ;;  %v423_v60 = vld [vmem:[#allocation3 + $0x468] sm:$0xff] }
  0x95   : > { %712 = vmatpush1.msra.mxu0 %v294_v61  ;;  %783 = vmatpush1.msra.mxu1 %v296_v62  ;;  %v432_v61 = vld [vmem:[#allocation3 + $0x4b0] sm:$0xff]  ;;  %v422_v62 = vld [vmem:[#allocation3 + $0x460] sm:$0xff] }
  0x96   : > { %713 = vmatprep.subr.mxu0 %v287_v0  ;;  %784 = vmatprep.subr.mxu1 %v289_v1  ;;  %v425_v0 = vld [vmem:[#allocation3 + $0x478] sm:$0xff]  ;;  %v415_v1 = vld [vmem:[#allocation3 + $0x428] sm:$0xff] }
  0x97   : > { %714 = vmatpush1.msra.mxu0 %v286_v2  ;;  %785 = vmatpush1.msra.mxu1 %v288_v3  ;;  %v424_v2 = vld [vmem:[#allocation3 + $0x470] sm:$0xff]  ;;  %v414_v3 = vld [vmem:[#allocation3 + $0x420] sm:$0xff] }
  0x98   : > { %715 = vmatprep.subr.mxu0 %v535_v4  ;;  %786 = vmatprep.subr.mxu1 %v537_v5  ;;  %v417_v4 = vld [vmem:[#allocation3 + $0x438] sm:$0xff]  ;;  %v416_v5 = vld [vmem:[#allocation3 + $0x430] sm:$0xff] }
  0x99   : > { %716 = vmatpush2.msra.mxu0 %v534_v6  ;;  %787 = vmatpush2.msra.mxu1 %v536_v7  ;;  %v841_v6 = vlaneseq }
  0x9a   : > { %717 = vmatprep.subr.mxu0 %v527_v8  ;;  %788 = vmatprep.subr.mxu1 %v529_v9  ;;  %v1291_v8 = vld [vmem:[#allocation6 + $0x4] ss:$8 sm:$0xf] }
  0x9b   : > { %718 = vmatpush2.msra.mxu0 %v526_v10  ;;  %789 = vmatpush2.msra.mxu1 %v528_v11  ;;  %v2807_v7 = vshrl.u32 %v841_v6, 7  ;;  %v1292_v9 = vld [vmem:[#allocation6 + $0x4] ss:$8 sm:$0xf0] }
  0x9c   : > { %719 = vmatprep.subr.mxu0 %v519_v12  ;;  %790 = vmatprep.subr.mxu1 %v521_v13  ;;  %v2812_v11 = vor.u32 %v1292_v9, %v1291_v8 }
  0x9d   : > { %720 = vmatpush2.msra.mxu0 %v518_v14  ;;  %791 = vmatpush2.msra.mxu1 %v520_v15  ;;  %v2810_v10 = vsub.s32 0, %v2807_v7  ;;  %v2815_v12 = vsub.s32 2, %v2807_v7  ;;  %v2818_v13 = vsub.s32 1, %v2807_v7 }
  0x9e   : > { %721 = vmatprep.subr.mxu0 %v511_v16  ;;  %792 = vmatprep.subr.mxu1 %v513_v17 }
  0x9f   : > { %722 = vmatpush2.msra.mxu0 %v510_v18  ;;  %793 = vmatpush2.msra.mxu1 %v512_v19  ;;  %v1306_v14 = vrot.slane %v2812_v11, %v2815_v12  ;;  %v1302_v15 = vrot.slane %v2812_v11, %v2818_v13 }
  0xa0   : > { %723 = vmatprep.subr.mxu0 %v503_v20  ;;  %794 = vmatprep.subr.mxu1 %v505_v21 }
  0xa1   : > { %724 = vmatpush2.msra.mxu0 %v502_v22  ;;  %795 = vmatpush2.msra.mxu1 %v504_v23 }
  0xa2   : > { %725 = vmatprep.subr.mxu0 %v495_v24  ;;  %796 = vmatprep.subr.mxu1 %v497_v25 }
  0xa3   : > { %726 = vmatpush2.msra.mxu0 %v494_v26  ;;  %797 = vmatpush2.msra.mxu1 %v496_v27  ;;  %v2862_v27 = vsub.s32 4, %v2807_v7 }
  0xa4   : > { %727 = vmatprep.subr.mxu0 %v487_v28  ;;  %798 = vmatprep.subr.mxu1 %v489_v29  ;;  %v2865_v28 = vsub.s32 5, %v2807_v7  ;;  %v2868_v29 = vsub.s32 6, %v2807_v7 }
  0xa5   : > { %728 = vmatpush2.msra.mxu0 %v486_v30  ;;  %799 = vmatpush2.msra.mxu1 %v488_v31  ;;  %v2873_v30 = vsub.s32 7, %v2807_v7  ;;  %v1314_v31 = vrot.slane %v2812_v11, %v2862_v27 }
  0xa6   : > { %729 = vmatprep.subr.mxu0 %v479_v32  ;;  %800 = vmatprep.subr.mxu1 %v481_v33  ;;  %v1318_v32 = vrot.slane %v2812_v11, %v2865_v28  ;;  %v1322_v33 = vrot.slane %v2812_v11, %v2868_v29 }
  0xa7   : > { %730 = vmatpush2.msra.mxu0 %v478_v34  ;;  %801 = vmatpush2.msra.mxu1 %v480_v35  ;;  %v1326_v35 = vrot.slane %v2812_v11, %v2873_v30 }
  0xa8   : > { %731 = vmatprep.subr.mxu0 %v471_v36  ;;  %802 = vmatprep.subr.mxu1 %v473_v37 }
  0xa9   : > { %732 = vmatpush2.msra.mxu0 %v470_v38  ;;  %803 = vmatpush2.msra.mxu1 %v472_v39 }
  0xaa   : > { %733 = vmatprep.subr.mxu0 %v463_v40  ;;  %804 = vmatprep.subr.mxu1 %v465_v41 }
  0xab   : > { %734 = vmatpush2.msra.mxu0 %v462_v42  ;;  %805 = vmatpush2.msra.mxu1 %v464_v43 }
  0xac   : > { %735 = vmatprep.subr.mxu0 %v455_v44  ;;  %806 = vmatprep.subr.mxu1 %v457_v45  ;;  %v3566_v45 = vmov 0  }
  0xad   : > { %736 = vmatpush2.msra.mxu0 %v454_v46  ;;  %807 = vmatpush2.msra.mxu1 %v456_v47 }
  0xae   : > { %737 = vmatprep.subr.mxu0 %v447_v48  ;;  %808 = vmatprep.subr.mxu1 %v449_v49 }
  0xaf   : > { %738 = vmatpush2.msra.mxu0 %v446_v50  ;;  %809 = vmatpush2.msra.mxu1 %v448_v51 }
  0xb0   : > { %739 = vmatprep.subr.mxu0 %v439_v52  ;;  %810 = vmatprep.subr.mxu1 %v441_v53 }
  0xb1   : > { %740 = vmatpush2.msra.mxu0 %v438_v54  ;;  %747 = vmatprep.mubr.f32.mxu0 %v2796_v63 }
  0xb2   : > { %741 = vmatprep.subr.mxu0 %v431_v55  ;;  %811 = vmatpush2.msra.mxu1 %v440_v57  ;;  %v2157_v57 = vld [vmem:[%s3562_s4] sm:$0xff] }
  0xb3   : > { %742 = vmatpush2.msra.mxu0 %v430_v58  ;;  %812 = vmatprep.subr.mxu1 %v433_v59  ;;  %v2171_v58 = vld [vmem:[%s3563_s5] sm:$0xff] }
  0xb4   : > { %743 = vmatprep.subr.mxu0 %v423_v60  ;;  %813 = vmatpush2.msra.mxu1 %v432_v61  ;;  %v1755_v59 = vld [vmem:[#allocation6 + $0x40] ss:$8 sm:$0xf] }
  0xb5   : > { %744 = vmatpush2.msra.mxu0 %v422_v62  ;;  %814 = vmatprep.subr.mxu1 %v425_v0  ;;  %v1756_v60 = vld [vmem:[#allocation6 + $0x40] ss:$8 sm:$0xf0]  ;;  %v2950_v0 = vand.u32 127, %v841_v6 }
  0xb6   : > { %745 = vmatprep.subr.mxu0 %v415_v1  ;;  %815 = vmatpush2.msra.mxu1 %v424_v2  ;;  %v2952_v1 = vor.u32 %v1756_v60, %v1755_v59  ;;  %v1405_v2 = vld [vmem:[#allocation6 + $0x5] ss:$8 sm:$0xf] }
  0xb7   : > { %746 = vmatpush2.msra.mxu0 %v414_v3  ;;  %816 = vmatprep.subr.mxu1 %v417_v4  ;;  %v1406_v3 = vld [vmem:[#allocation6 + $0x5] ss:$8 sm:$0xf0]  ;;  %vm1745_vm0 = vcmp.lt.s32.totalorder %v2950_v0, 95  ;;  %vm1395_vm1 = vcmp.lt.s32.totalorder %v2950_v0, 127  ;;  %vm1627_vm2 = vcmp.lt.s32.totalorder %v2950_v0, 96 }
  0xb8   : > { %748 = vmatmul.mubr.f32.vlgmr.msra.gmra.mxu0 %v2792_v56  ;;  %817 = vmatpush2.msra.mxu1 %v416_v5  ;;  %v1766_v8 = vrot.slane %v2952_v1, %v2818_v13  ;;  %v2963_v9 = vor.u32 %v1406_v3, %v1405_v2  ;;  %vm1513_vm3 = vcmp.lt.s32.totalorder %v2950_v0, 97  ;;  %vm956_vm5 = vcmp.lt.s32.totalorder %v2950_v0, 32 }
  0xb9   : > { %818 = vmatprep.mubr.f32.mxu1 %v2796_v63  ;;  %v2821_v63 = vsub.s32 3, %v2807_v7  ;;  %2025 = vmatprep.mubr.bf16.mxu0 %v3566_v45  ;;  %v1762_v7 = vrot.slane %v2952_v1, %v2810_v10  ;;  %vm1188_vm6 = vcmp.lt.s32.totalorder %v2950_v0, 1  ;;  %vm843_vm7 = vcmp.lt.s32.totalorder %v2950_v0, 33 }
  0xba   : > { %819 = vmatmul.mubr.f32.vlgmr.msra.gmra.mxu1 %v2792_v56  ;;  %v1298_v56 = vrot.slane %v2812_v11, %v2810_v10  ;;  %2490 = vset.pattern.permute.xlu0 %v3566_v45  ;;  %vm1074_vm8 = vcmp.lt.s32.totalorder %v2950_v0, 31 }
  0xbb   : > { %v1310_v16 = vrot.slane %v2812_v11, %v2821_v63  ;;  %2066 = vmatprep.mubr.bf16.mxu1 %v3566_v45  ;;  %2491 = vset.pattern.permute.xlu1 %v3566_v45 }
 0x137   : > { %v607_v17 = vpop.f32.mrf.mxu0  ;;  %v678_v18 = vpop.f32.mrf.mxu1 }
 0x138   : > { %1733 = vrot.lane.b32.xlu1 %v678_v18, %s2648_s13  ;;  %1729 = vrot.lane.b32.xlu0 %v607_v17, %s2648_s13  ;;  %v1335_v21 = vmul.f32 %v1298_v56, %v607_v17  ;;  %v1337_v22 = vmul.f32 %v1306_v14, %v678_v18 }
 0x139   : > { %v609_v19 = vpop.f32.mrf.mxu0  ;;  %v680_v20 = vpop.f32.mrf.mxu1 }
 0x13a   : > { %v1336_v23 = vmul.f32 %v1302_v15, %v609_v19  ;;  %v1338_v24 = vmul.f32 %v1310_v16, %v680_v20 }
 0x13c   : > { %v2398_v25 = vpack.c.bf16 %v1336_v23, %v1335_v21  ;;  %v2399_v26 = vpack.c.bf16 %v1338_v24, %v1337_v22  ;;  %1379 = vrot.lane.b32.xlu1 %v607_v17, %s2649_s14  ;;  %1611 = vrot.lane.b32.xlu0 %v607_v17, %s2650_s15  ;;  %v1523_v21 = vld [vmem:[#allocation6 + $0x6] ss:$8 sm:$0xf] }
 0x13d   : > { %v1524_v22 = vld [vmem:[#allocation6 + $0x6] ss:$8 sm:$0xf0] }
 0x13e   : > { %1375 = vst [vmem:[#allocation2 + $0x8] sm:$0x33] %v2398_v25  ;;  %1376 = vst [vmem:[#allocation2 + $0x88] sm:$0x33] %v2399_v26 }
 0x140   : > { %1383 = vrot.lane.b32.xlu1 %v678_v18, %s2649_s14  ;;  %1615 = vrot.lane.b32.xlu0 %v678_v18, %s2650_s15 }
 0x144   : > { %1497 = vrot.lane.b32.xlu1 %v607_v17, %s2651_s16  ;;  %940 = vrot.lane.b32.xlu0 %v607_v17, %s2652_s17 }
 0x148   : > { %1501 = vrot.lane.b32.xlu1 %v678_v18, %s2651_s16  ;;  %944 = vrot.lane.b32.xlu0 %v678_v18, %s2652_s17 }
 0x14c   : > { %1172 = vrot.lane.b32.xlu1 %v607_v17, %s2653_s18  ;;  %825 = vrot.lane.b32.xlu0 %v607_v17, %s2654_s19 }
 0x150   : > { %1176 = vrot.lane.b32.xlu1 %v678_v18, %s2653_s18  ;;  %829 = vrot.lane.b32.xlu0 %v678_v18, %s2654_s19 }
 0x154   : > { %1058 = vrot.lane.b32.xlu1 %v607_v17, %s2655_s20  ;;  %1731 = vrot.lane.b32.xlu0 %v609_v19, %s2648_s13  ;;  %v1412_v17 = vrot.slane %v2963_v9, %v2810_v10 }
 0x158   : > { %1062 = vrot.lane.b32.xlu1 %v678_v18, %s2655_s20  ;;  %1381 = vrot.lane.b32.xlu0 %v609_v19, %s2649_s14  ;;  %v1416_v18 = vrot.slane %v2963_v9, %v2818_v13 }
 0x15c   : > { %1735 = vrot.lane.b32.xlu1 %v680_v20, %s2648_s13  ;;  %1385 = vrot.lane.b32.xlu0 %v680_v20, %s2649_s14 }
 0x160   : > { %1613 = vrot.lane.b32.xlu1 %v609_v19, %s2650_s15  ;;  %1499 = vrot.lane.b32.xlu0 %v609_v19, %s2651_s16 }
 0x164   : > { %1617 = vrot.lane.b32.xlu1 %v680_v20, %s2650_s15  ;;  %1503 = vrot.lane.b32.xlu0 %v680_v20, %s2651_s16 }
 0x168   : > { %942 = vrot.lane.b32.xlu1 %v609_v19, %s2652_s17  ;;  %1174 = vrot.lane.b32.xlu0 %v609_v19, %s2653_s18 }
 0x16c   : > { %946 = vrot.lane.b32.xlu1 %v680_v20, %s2652_s17  ;;  %1178 = vrot.lane.b32.xlu0 %v680_v20, %s2653_s18 }
 0x170   : > { %827 = vrot.lane.b32.xlu1 %v609_v19, %s2654_s19  ;;  %1060 = vrot.lane.b32.xlu0 %v609_v19, %s2655_s20  ;;  %v1637_v19 = vld [vmem:[#allocation6 + $0x7] ss:$8 sm:$0xf] }
 0x174   : > { %831 = vrot.lane.b32.xlu1 %v680_v20, %s2654_s19  ;;  %1064 = vrot.lane.b32.xlu0 %v680_v20, %s2655_s20  ;;  %v1638_v20 = vld [vmem:[#allocation6 + $0x7] ss:$8 sm:$0xf0] }
 0x178   : > { %v749_v34 = vpop.f32.mrf.mxu0 }
 0x179   : > { %1387 = vrot.lane.b32.xlu1 %v749_v34, %s2649_s14  ;;  %1737 = vrot.lane.b32.xlu0 %v749_v34, %s2648_s13  ;;  %v1339_v38 = vmul.f32 %v1314_v31, %v749_v34 }
 0x17a   : > { %v751_v36 = vpop.f32.mrf.mxu0  ;;  %v820_v37 = vpop.f32.mrf.mxu1 }
 0x17b   : > { %v1340_v39 = vmul.f32 %v1318_v32, %v751_v36  ;;  %v1341_v40 = vmul.f32 %v1322_v33, %v820_v37  ;;  %v2986_v32 = vor.u32 %v1638_v20, %v1637_v19  ;;  %v1199_v19 = vld [vmem:[#allocation6 + $0x3] ss:$8 sm:$0xf0] }
 0x17c   : > { %v822_v41 = vpop.f32.mrf.mxu1 }
 0x17d   : > { %v2400_v42 = vpack.c.bf16 %v1340_v39, %v1339_v38  ;;  %1505 = vrot.lane.b32.xlu1 %v749_v34, %s2651_s16  ;;  %1619 = vrot.lane.b32.xlu0 %v749_v34, %s2650_s15  ;;  %v1342_v43 = vmul.f32 %v1326_v35, %v822_v41  ;;  %v2988_v35 = vor.u32 %v1524_v22, %v1523_v21 }
 0x17e   : > { %v1644_v39 = vrot.slane %v2986_v32, %v2810_v10 }
 0x17f   : > { %1377 = vst [vmem:[#allocation2 + $0x28] sm:$0x33] %v2400_v42  ;;  %v2401_v44 = vpack.c.bf16 %v1342_v43, %v1341_v40  ;;  %v1648_v40 = vrot.slane %v2986_v32, %v2818_v13  ;;  %v1530_v42 = vrot.slane %v2988_v35, %v2810_v10  ;;  %v1534_v43 = vrot.slane %v2988_v35, %v2818_v13 }
 0x181   : > { %1378 = vst [vmem:[#allocation2 + $0x40] sm:$0x33] %v2401_v44  ;;  %1741 = vrot.lane.b32.xlu1 %v820_v37, %s2648_s13  ;;  %1391 = vrot.lane.b32.xlu0 %v820_v37, %s2649_s14 }
 0x185   : > { %1623 = vrot.lane.b32.xlu1 %v820_v37, %s2650_s15  ;;  %1509 = vrot.lane.b32.xlu0 %v820_v37, %s2651_s16 }
 0x189   : > { %1180 = vrot.lane.b32.xlu1 %v749_v34, %s2653_s18  ;;  %948 = vrot.lane.b32.xlu0 %v749_v34, %s2652_s17 }
 0x18d   : > { %1184 = vrot.lane.b32.xlu1 %v820_v37, %s2653_s18  ;;  %952 = vrot.lane.b32.xlu0 %v820_v37, %s2652_s17 }
 0x191   : > { %1066 = vrot.lane.b32.xlu1 %v749_v34, %s2655_s20  ;;  %833 = vrot.lane.b32.xlu0 %v749_v34, %s2654_s19 }
 0x195   : > { %1186 = vrot.lane.b32.xlu1 %v822_v41, %s2653_s18  ;;  %837 = vrot.lane.b32.xlu0 %v820_v37, %s2654_s19 }
 0x199   : > { %1072 = vrot.lane.b32.xlu1 %v822_v41, %s2655_s20  ;;  %954 = vrot.lane.b32.xlu0 %v822_v41, %s2652_s17 }
 0x19d   : > { %839 = vrot.lane.b32.xlu0 %v822_v41, %s2654_s19  ;;  %1389 = vrot.lane.b32.xlu1 %v751_v36, %s2649_s14 }
 0x1a1   : > { %1393 = vrot.lane.b32.xlu1 %v822_v41, %s2649_s14  ;;  %1739 = vrot.lane.b32.xlu0 %v751_v36, %s2648_s13 }
 0x1a5   : > { %1507 = vrot.lane.b32.xlu1 %v751_v36, %s2651_s16  ;;  %1743 = vrot.lane.b32.xlu0 %v822_v41, %s2648_s13  ;;  %s2305_s13 = sshll.u32 %s272_s12, 6 }
 0x1a6   : > { %s3506_s14 = scalar_lea.vmem [#allocation8], %s2305_s13 }
 0x1a9   : > { %1511 = vrot.lane.b32.xlu1 %v822_v41, %s2651_s16  ;;  %1621 = vrot.lane.b32.xlu0 %v751_v36, %s2650_s15  ;;  %s2216_s16 = sshll.u32 %s3506_s14, 4  ;;  %s2217_s16 = int_to_ptr.vmem [resolvable:$true] %s2216_s16 }
 0x1aa   : > { %v2913_v46 = vpop.permute.xlu1 %1733  ;;  %v2915_v47 = vpop.permute.xlu0 %1729  ;;  %p2581_p11 = scmp.lt.s32.totalorder %s2217_s16, %s2579_s28 }
 0x1ad   : > { %950 = vrot.lane.b32.xlu1 %v751_v36, %s2652_s17  ;;  %1625 = vrot.lane.b32.xlu0 %v822_v41, %s2650_s15  ;;  %s2418_s15 = sshll.u32 %s2714_s25, 10  ;;  %s2202_s25 = scalar_lea.sflag [#allocation5], %s272_s12 }
 0x1ae   : > { %v2919_v48 = vpop.permute.xlu1 %1379  ;;  %v2921_v49 = vpop.permute.xlu0 %1611 }
 0x1af   : > { %3579 = vst [vmem:[#allocation12_spill] sm:$0xff] %v2921_v49 }
 0x1b1   : > { %835 = vrot.lane.b32.xlu1 %v751_v36, %s2654_s19  ;;  %1182 = vrot.lane.b32.xlu0 %v751_v36, %s2653_s18  ;;  %s3519_s19 = scalar_lea.hbm %s3564_s6, %s2418_s15 }
 0x1b2   : > { %v2925_v50 = vpop.permute.xlu1 %1383  ;;  %v2927_v51 = vpop.permute.xlu0 %1615 }
 0x1b5   : > { %1070 = vrot.lane.b32.xlu1 %v820_v37, %s2655_s20  ;;  %1068 = vrot.lane.b32.xlu0 %v751_v36, %s2655_s20  ;;  %s2574_s20 = scalar_lea.vmem %s2217_s16, 1024 }
 0x1b6   : > { %v2931_v52 = vpop.permute.xlu1 %1497  ;;  %v2933_v53 = vpop.permute.xlu0 %940  ;;  %p2575_p10 = scmp.ne.s32.totalorder %s2217_s16, %s2574_s20  ;;  %p2582_p0 = scmp.lt.s32.totalorder %s2580_s29, %s2574_s20 }
 0x1b8   : > { %p2576_p12 = pnand %p2575_p10, %p2731_p5  ;;  %p2583_p1 = por %p2582_p0, %p2581_p11 }
 0x1b9   : > { %2160 = vperm.xlu0 %2490, %v2157_v57   ;;  %2174 = vperm.xlu1 %2491, %v2171_v58  }
 0x1ba   : > { %v2935_v54 = vpop.permute.xlu1 %1501  ;;  %v2937_v55 = vpop.permute.xlu0 %944  ;;  %p2577_p8 = pneg %p2576_p12 }
 0x1bc   : > { %p2584_p3 = pnand %p2583_p1, %p2577_p8 }
 0x1be   : > { %v2945_v61 = vpop.permute.xlu1 %1172  ;;  %v2947_v62 = vpop.permute.xlu0 %825 }
 0x1c2   : > { %v2954_v4 = vpop.permute.xlu1 %1176  ;;  %v2956_v5 = vpop.permute.xlu0 %829 }
 0x1c6   : > { %v2965_v6 = vpop.permute.xlu1 %1058  ;;  %v1732_v11 = vpop.permute.xlu0 %1731 }
 0x1c7   : > { %v1751_v56 = vsel %vm1745_vm0, %v1732_v11, %v2913_v46  ;;  %v1752_v14 = vsel %vm1745_vm0, %v2915_v47, %v1732_v11 }
 0x1c8   : > { %v1799_v15 = vmul.f32 %v1762_v7, %v1752_v14  ;;  %v1800_v16 = vmul.f32 %v1766_v8, %v1751_v56  ;;  %v966_v14 = vld [vmem:[#allocation6 + $0x1] ss:$8 sm:$0xf] }
 0x1ca   : > { %v2414_v23 = vpack.c.bf16 %v1800_v16, %v1799_v15  ;;  %v2978_v24 = vpop.permute.xlu1 %1062  ;;  %v1382_v25 = vpop.permute.xlu0 %1381  ;;  %v967_v15 = vld [vmem:[#allocation6 + $0x1] ss:$8 sm:$0xf0] }
 0x1cb   : > { %v1401_v26 = vsel %vm1395_vm1, %v1382_v25, %v2925_v50  ;;  %v1402_v31 = vsel %vm1395_vm1, %v2919_v48, %v1382_v25 }
 0x1cc   : > { %1839 = vst [vmem:[#allocation2 + $0x20] sm:$0x33] %v2414_v23  ;;  %v1449_v33 = vmul.f32 %v1412_v17, %v1402_v31  ;;  %v1450_v34 = vmul.f32 %v1416_v18, %v1401_v26  ;;  %v1198_v18 = vld [vmem:[#allocation6 + $0x3] ss:$8 sm:$0xf]  ;;  %v3022_v31 = vor.u32 %v967_v15, %v966_v14 }
 0x1ce   : > { %v2402_v36 = vpack.c.bf16 %v1450_v34, %v1449_v33  ;;  %v2990_v37 = vpop.permute.xlu1 %1735  ;;  %v2992_v38 = vpop.permute.xlu0 %1385  ;;  %v3024_v33 = vor.u32 %v1199_v19, %v1198_v18 }
 0x1d0   : > { %v1485_v41 = vrot.slane %v2402_v36, 6 }
 0x1d2   : > { %1493 = vst [vmem:[#allocation2 + $0x8] sm:$0xcc] %v1485_v41  ;;  %v1614_v44 = vpop.permute.xlu1 %1613  ;;  %v1500_v57 = vpop.permute.xlu0 %1499  ;;  %v981_v41 = vrot.slane %v3022_v31, %v2815_v12 }
 0x1d3   : > { %v1633_v58 = vsel %vm1627_vm2, %v1614_v44, %v2927_v51  ;;  %v1634_v59 = vsel %vm1627_vm2, %v2921_v49, %v1614_v44  ;;  %v1519_v60 = vsel %vm1513_vm3, %v1500_v57, %v2935_v54  ;;  %v1520_v2 = vsel %vm1513_vm3, %v2931_v52, %v1500_v57  ;;  %v1860_v3 = vld [vmem:[#allocation2 + $0x20] sm:$0x33]  ;;  %v1084_v57 = vld [vmem:[#allocation6 + $0x2] ss:$8 sm:$0xf] }
 0x1d4   : > { %v1681_v7 = vmul.f32 %v1644_v39, %v1634_v59  ;;  %v1682_v8 = vmul.f32 %v1648_v40, %v1633_v58  ;;  %v1567_v11 = vmul.f32 %v1530_v42, %v1520_v2  ;;  %v1568_v56 = vmul.f32 %v1534_v43, %v1519_v60  ;;  %v852_v39 = vld [vmem:[#allocation6] ss:$8 sm:$0xf]  ;;  %v1085_v58 = vld [vmem:[#allocation6 + $0x2] ss:$8 sm:$0xf0] }
 0x1d5   : > { %v2361_v16 = vcombine.high %v1860_v3, %v1860_v3  ;;  %v2360_v17 = vcombine.low %v1860_v3, %v1860_v3  ;;  %v853_v40 = vld [vmem:[#allocation6] ss:$8 sm:$0xf0]  ;;  %v1213_v42 = vrot.slane %v3024_v33, %v2815_v12  ;;  %v985_v43 = vrot.slane %v3022_v31, %v2821_v63 }
 0x1d6   : > { %v2410_v20 = vpack.c.bf16 %v1682_v8, %v1681_v7  ;;  %v2406_v21 = vpack.c.bf16 %v1568_v56, %v1567_v11  ;;  %v3016_v22 = vpop.permute.xlu1 %1617  ;;  %v3018_v23 = vpop.permute.xlu0 %1503  ;;  %v1217_v44 = vrot.slane %v3024_v33, %v2821_v63  ;;  %v3060_v11 = vor.u32 %v853_v40, %v852_v39 }
 0x1d7   : > { %2368 = vmatprep.subr.msk.bf16.mxu0 %vm1968_vm4, %v2361_v16  ;;  %v1970_v25 = vsel %vm1968_vm4, %v2360_v17, 0  ;;  %v3062_v56 = vor.u32 %v1085_v58, %v1084_v57 }
 0x1d8   : > { %v1717_v26 = vrot.slane %v2410_v20, 6  ;;  %1607 = vst [vmem:[#allocation2 + $0x58] sm:$0x33] %v2406_v21  ;;  %2004 = vmatpush1.bf16.msra.mxu0 %v1970_v25 }
 0x1da   : > { %1725 = vst [vmem:[#allocation2 + $0x58] sm:$0xcc] %v1717_v26  ;;  %v3027_v34 = vpop.permute.xlu1 %942  ;;  %v3030_v36 = vpop.permute.xlu0 %1174  ;;  %v1099_v26 = vrot.slane %v3062_v56, %v2815_v12 }
 0x1db   : > { %v962_v59 = vsel %vm956_vm5, %v3027_v34, %v2937_v55  ;;  %v1194_v60 = vsel %vm1188_vm6, %v3030_v36, %v2954_v4 }
 0x1dc   : > { %v1012_v14 = vmul.f32 %v981_v41, %v962_v59  ;;  %v1244_v15 = vmul.f32 %v1213_v42, %v1194_v60  ;;  %v871_v41 = vrot.slane %v3060_v11, %v2821_v63  ;;  %v1103_v42 = vrot.slane %v3062_v56, %v2821_v63 }
 0x1dd   : > { %v1770_v59 = vrot.slane %v2952_v1, %v2815_v12 }
 0x1de   : > { %v3048_v2 = vpop.permute.xlu1 %946  ;;  %v3050_v3 = vpop.permute.xlu0 %1178 }
 0x1df   : > { %v961_v7 = vsel %vm956_vm5, %v2937_v55, %v3048_v2  ;;  %v1193_v8 = vsel %vm1188_vm6, %v2954_v4, %v3050_v3  ;;  %v867_v4 = vrot.slane %v3060_v11, %v2815_v12 }
 0x1e0   : > { %v1013_v16 = vmul.f32 %v985_v43, %v961_v7  ;;  %v1245_v17 = vmul.f32 %v1217_v44, %v1193_v8 }
 0x1e1   : > { %v2495_v18 = vld [vmem:[#allocation2 + $0x8] ss:$80 sps:$4 sm:$0xff]   ;;  %v2497_v19 = vld [vmem:[#allocation2 + $0xc] ss:$80 sps:$4 sm:$0xff]  }
 0x1e2   : > { %v2387_v20 = vpack.c.bf16 %v1013_v16, %v1012_v14  ;;  %v2395_v21 = vpack.c.bf16 %v1245_v17, %v1244_v15  ;;  %v3065_v55 = vpop.permute.xlu1 %827  ;;  %v3068_v25 = vpop.permute.xlu0 %1060  ;;  %2005 = vmatprep.subr.bf16.mxu0 %v2497_v19  ;;  %v1750_v17 = vsel %vm1745_vm0, %v2913_v46, %v2990_v37  ;;  %v1774_v19 = vrot.slane %v2952_v1, %v2821_v63 }
 0x1e3   : > { %2006 = vmatpush1.bf16.msra.mxu0 %v2495_v18  ;;  %v849_v43 = vsel %vm843_vm7, %v3065_v55, %v2956_v5  ;;  %v1080_v44 = vsel %vm1074_vm8, %v3068_v25, %v2978_v24  ;;  %v1420_v18 = vrot.slane %v2963_v9, %v2815_v12  ;;  %v1538_v46 = vrot.slane %v2988_v35, %v2815_v12 }
 0x1e4   : > { %v1047_v39 = vrot.slane %v2387_v20, 6  ;;  %v1279_v40 = vrot.slane %v2395_v21, 6  ;;  %v898_v8 = vmul.f32 %v867_v4, %v849_v43  ;;  %v1130_v14 = vmul.f32 %v1099_v26, %v1080_v44 }
 0x1e5   : > { %v1652_v4 = vrot.slane %v2986_v32, %v2815_v12  ;;  %v1632_v44 = vsel %vm1627_vm2, %v2927_v51, %v3016_v22 }
 0x1e6   : > { %1055 = vst [vmem:[#allocation2 + $0x38] sm:$0xcc] %v1047_v39  ;;  %1287 = vst [vmem:[#allocation2 + $0x68] sm:$0xcc] %v1279_v40  ;;  %v3086_v57 = vpop.permute.xlu1 %831  ;;  %v3088_v58 = vpop.permute.xlu0 %1064  ;;  %v1542_v40 = vrot.slane %v2988_v35, %v2821_v63 }
 0x1e7   : > { %v848_v60 = vsel %vm843_vm7, %v2956_v5, %v3086_v57  ;;  %v1079_v7 = vsel %vm1074_vm8, %v2978_v24, %v3088_v58  ;;  %v1424_v5 = vrot.slane %v2963_v9, %v2821_v63  ;;  %v1400_v24 = vsel %vm1395_vm1, %v2925_v50, %v2992_v38 }
 0x1e8   : > { %v899_v15 = vmul.f32 %v871_v41, %v848_v60  ;;  %v1131_v16 = vmul.f32 %v1103_v42, %v1079_v7  ;;  %v1801_v41 = vmul.f32 %v1770_v59, %v1750_v17  ;;  %v1656_v42 = vrot.slane %v2986_v32, %v2821_v63 }
 0x1e9   : > { %v1451_v43 = vmul.f32 %v1420_v18, %v1400_v24  ;;  %v1683_v63 = vmul.f32 %v1652_v4, %v1632_v44 }
 0x1ea   : > { %v2383_v20 = vpack.c.bf16 %v899_v15, %v898_v8  ;;  %v2391_v21 = vpack.c.bf16 %v1131_v16, %v1130_v14 }
 0x1eb   : > { %v3118_v26 = vpop.permute.xlu1 %1387  ;;  %v3120_v39 = vpop.permute.xlu0 %1737 }
 0x1ec   : > { %937 = vst [vmem:[#allocation2 + $0x38] sm:$0x33] %v2383_v20  ;;  %1169 = vst [vmem:[#allocation2 + $0x68] sm:$0x33] %v2391_v21  ;;  %v1399_v50 = vsel %vm1395_vm1, %v2992_v38, %v3118_v26  ;;  %v1749_v12 = vsel %vm1745_vm0, %v2990_v37, %v3120_v39  ;;  %v1518_v38 = vsel %vm1513_vm3, %v2935_v54, %v3018_v23 }
 0x1ed   : > { %v1452_v59 = vmul.f32 %v1424_v5, %v1399_v50  ;;  %v1802_v60 = vmul.f32 %v1774_v19, %v1749_v12  ;;  %v1569_v16 = vmul.f32 %v1538_v46, %v1518_v38 }
 0x1ef   : > { %v2403_v7 = vpack.c.bf16 %v1452_v59, %v1451_v43  ;;  %v2415_v8 = vpack.c.bf16 %v1802_v60, %v1801_v41  ;;  %v3142_v14 = vpop.permute.xlu1 %1505  ;;  %v3144_v37 = vpop.permute.xlu0 %1619 }
 0x1f0   : > { %v1517_v15 = vsel %vm1513_vm3, %v3018_v23, %v3142_v14  ;;  %v1631_v51 = vsel %vm1627_vm2, %v3016_v22, %v3144_v37 }
 0x1f1   : > { %v1486_v17 = vrot.slane %v2403_v7, 6  ;;  %1840 = vst [vmem:[#allocation2 + $0x48] sm:$0x33] %v2415_v8  ;;  %v1570_v54 = vmul.f32 %v1542_v40, %v1517_v15  ;;  %v1684_v18 = vmul.f32 %v1656_v42, %v1631_v51  ;;  %v1209_v15 = vrot.slane %v3024_v33, %v2818_v13 }
 0x1f2   : > { %v863_v51 = vrot.slane %v3060_v11, %v2818_v13 }
 0x1f3   : > { %1494 = vst [vmem:[#allocation2 + $0x88] sm:$0xcc] %v1486_v17  ;;  %v2407_v5 = vpack.c.bf16 %v1570_v54, %v1569_v16  ;;  %v2411_v19 = vpack.c.bf16 %v1684_v18, %v1683_v63  ;;  %v3154_v24 = vpop.permute.xlu1 %1741  ;;  %v3156_v20 = vpop.permute.xlu0 %1391  ;;  %v2505_v60 = vld [vmem:[#allocation2 + $0x3c] ss:$48 sps:$4 sm:$0xff]   ;;  %v2503_v7 = vld [vmem:[#allocation2 + $0x38] ss:$48 sps:$4 sm:$0xff]   ;;  %v977_v63 = vrot.slane %v3022_v31, %v2818_v13  ;;  %v1095_v16 = vrot.slane %v3062_v56, %v2818_v13 }
 0x1f4   : > { %v1205_v18 = vrot.slane %v3024_v33, %v2810_v10  ;;  %v1440_v54 = vrot.slane %v2963_v9, %v2873_v30 }
 0x1f5   : > { %1608 = vst [vmem:[#allocation2 + $0x10] sm:$0x33] %v2407_v5  ;;  %v1718_v21 = vrot.slane %v2411_v19, 6  ;;  %v1195_v5 = vsel %vm1188_vm6, %v2945_v61, %v3030_v36  ;;  %v963_v36 = vsel %vm956_vm5, %v2933_v53, %v3027_v34  ;;  %v1778_v34 = vrot.slane %v2952_v1, %v2862_v27 }
 0x1f6   : > { %v1243_v13 = vmul.f32 %v1209_v15, %v1195_v5  ;;  %v1011_v17 = vmul.f32 %v977_v63, %v963_v36  ;;  %v850_v63 = vsel %vm843_vm7, %v2947_v62, %v3065_v55  ;;  %v1668_v55 = vrot.slane %v2986_v32, %v2868_v29 }
 0x1f7   : > { %1726 = vst [vmem:[#allocation2 + $0x10] sm:$0xcc] %v1718_v21  ;;  %v3158_v23 = vpop.permute.xlu1 %1623  ;;  %v3160_v4 = vpop.permute.xlu0 %1509  ;;  %v1428_v21 = vrot.slane %v2963_v9, %v2862_v27 }
 0x1f8   : > { %v1861_v22 = vld [vmem:[#allocation2 + $0x48] sm:$0x33] }
 0x1f9   : > { %v2363_v46 = vcombine.high %v1861_v22, %v1861_v22  ;;  %v2362_v41 = vcombine.low %v1861_v22, %v1861_v22 }
 0x1fb   : > { %v3162_v50 = vpop.permute.xlu1 %1180  ;;  %2370 = vmatprep.subr.msk.bf16.mxu1 %vm1968_vm4, %v2363_v46  ;;  %v3165_v40 = vpop.permute.xlu0 %948  ;;  %v1976_v12 = vsel %vm1968_vm4, %v2362_v41, 0  ;;  %v1091_v41 = vrot.slane %v3062_v56, %v2810_v10 }
 0x1fc   : > { %2045 = vmatpush1.bf16.msra.mxu1 %v1976_v12  ;;  %v973_v12 = vrot.slane %v3022_v31, %v2810_v10 }
 0x1fe   : > { %v2500_v42 = vld [vmem:[#allocation2 + $0x88] ss:$-120 sps:$4 sm:$0xff]   ;;  %v2502_v43 = vld [vmem:[#allocation2 + $0x8c] ss:$-120 sps:$4 sm:$0xff]  }
 0x1ff   : > { %v3168_v44 = vpop.permute.xlu1 %1184  ;;  %v3170_v59 = vpop.permute.xlu0 %952  ;;  %2046 = vmatprep.subr.bf16.mxu1 %v2502_v43 }
 0x200   : > { %2047 = vmatpush1.bf16.msra.mxu1 %v2500_v42  ;;  %v3213_v42 = vld [vmem:[%s3561_s3] sm:$0xf] }
 0x201   : > { %2048 = vmatprep.subr.bf16.mxu1 %v2505_v60  ;;  %3581 = vst [vmem:[#allocation14_spill] sm:$0xff] %v3213_v42  ;;  %v859_v60 = vrot.slane %v3060_v11, %v2810_v10  ;;  %v1081_v10 = vsel %vm1074_vm8, %v2965_v6, %v3068_v25 }
 0x203   : > { %v3172_v38 = vpop.permute.xlu1 %1066  ;;  %v3174_v8 = vpop.permute.xlu0 %833 }
 0x204   : > { %2049 = vmatpush1.bf16.msra.mxu1 %v2503_v7  ;;  %v1436_v7 = vrot.slane %v2963_v9, %v2868_v29 }
 0x207   : > { %v3200_v22 = vpop.permute.xlu1 %1186  ;;  %v3202_v46 = vpop.permute.xlu0 %837  ;;  %2371 = vmatmul.mubr.msk.bf16.vlgmr.msra.gmra.mxu1 %vm1964_vm9, %v3213_v42  ;;  %v1129_v42 = vmul.f32 %v1095_v16, %v1081_v10 }
 0x208   : > { %3580 = vst [vmem:[#allocation13_spill] sm:$0xff] %v3202_v46  ;;  %v1196_v43 = vsel %vm1188_vm6, %v3200_v22, %v2945_v61  ;;  %v1432_v61 = vrot.slane %v2963_v9, %v2865_v28  ;;  %2148 = vmatprep.mubr.bf16.mxu1 %v3566_v45  ;;  %v1550_v45 = vrot.slane %v2988_v35, %v2865_v28 }
 0x209   : > { %v1242_v19 = vmul.f32 %v1205_v18, %v1196_v43  ;;  %v1782_v43 = vrot.slane %v2952_v1, %v2865_v28 }
 0x20b   : > { %v2394_v15 = vpack.c.bf16 %v1243_v13, %v1242_v19  ;;  %v3244_v18 = vpop.permute.xlu1 %1072  ;;  %v3246_v5 = vpop.permute.xlu0 %954 }
 0x20c   : > { %v1082_v9 = vsel %vm1074_vm8, %v3244_v18, %v2965_v6  ;;  %v964_v19 = vsel %vm956_vm5, %v3246_v5, %v2933_v53  ;;  %v1790_v6 = vrot.slane %v2952_v1, %v2873_v30  ;;  %v1672_v53 = vrot.slane %v2986_v32, %v2873_v30 }
 0x20d   : > { %v1278_v49 = vrot.slane %v2394_v15, 6  ;;  %v1128_v25 = vmul.f32 %v1091_v41, %v1082_v9  ;;  %v1010_v46 = vmul.f32 %v973_v12, %v964_v19 }
 0x20f   : > { %1286 = vst [vmem:[#allocation2 + $0x30] sm:$0xcc] %v1278_v49  ;;  %v2390_v13 = vpack.c.bf16 %v1129_v42, %v1128_v25  ;;  %v2386_v16 = vpack.c.bf16 %v1011_v17, %v1010_v46  ;;  %v3274_v10 = vpop.permute.xlu0 %839  ;;  %v1390_v41 = vpop.permute.xlu1 %1389  ;;  %v993_v46 = vrot.slane %v3022_v31, %v2865_v28  ;;  %v897_v42 = vmul.f32 %v863_v51, %v850_v63 }
 0x210   : > { %v851_v15 = vsel %vm843_vm7, %v3274_v10, %v2947_v62  ;;  %v1397_v49 = vsel %vm1395_vm1, %v1390_v41, %v3156_v20  ;;  %v1398_v17 = vsel %vm1395_vm1, %v3118_v26, %v1390_v41  ;;  %v997_v62 = vrot.slane %v3022_v31, %v2868_v29 }
 0x211   : > { %1168 = vst [vmem:[#allocation2 + $0x30] sm:$0x33] %v2390_v13  ;;  %v1046_v25 = vrot.slane %v2386_v16, 6  ;;  %v896_v9 = vmul.f32 %v859_v60, %v851_v15  ;;  %v1453_v19 = vmul.f32 %v1428_v21, %v1398_v17  ;;  %v1454_v12 = vmul.f32 %v1432_v61, %v1397_v49 }
 0x212   : > { %v879_v51 = vrot.slane %v3060_v11, %v2865_v28  ;;  %v883_v21 = vrot.slane %v3060_v11, %v2868_v29  ;;  %v1225_v60 = vrot.slane %v3024_v33, %v2865_v28 }
 0x213   : > { %1054 = vst [vmem:[#allocation2] sm:$0xcc] %v1046_v25  ;;  %v2382_v26 = vpack.c.bf16 %v897_v42, %v896_v9  ;;  %v1394_v41 = vpop.permute.xlu1 %1393  ;;  %v1740_v36 = vpop.permute.xlu0 %1739  ;;  %v2404_v61 = vpack.c.bf16 %v1454_v12, %v1453_v19  ;;  %v1192_v9 = vsel %vm1188_vm6, %v3050_v3, %v3162_v50 }
 0x214   : > { %v1396_v13 = vsel %vm1395_vm1, %v3156_v20, %v1394_v41  ;;  %v1403_v63 = vsel %vm1395_vm1, %v1394_v41, %v2919_v48  ;;  %v1747_v16 = vsel %vm1745_vm0, %v1740_v36, %v3154_v24  ;;  %v1748_v17 = vsel %vm1745_vm0, %v3120_v39, %v1740_v36 }
 0x215   : > { %936 = vst [vmem:[#allocation2] sm:$0x33] %v2382_v26  ;;  %v1455_v15 = vmul.f32 %v1436_v7, %v1396_v13  ;;  %v1456_v49 = vmul.f32 %v1440_v54, %v1403_v63  ;;  %v1804_v12 = vmul.f32 %v1782_v43, %v1747_v16  ;;  %v1487_v42 = vrot.slane %v2404_v61, 6 }
 0x216   : > { %v1803_v25 = vmul.f32 %v1778_v34, %v1748_v17  ;;  %v1229_v20 = vrot.slane %v3024_v33, %v2868_v29  ;;  %v1119_v48 = vrot.slane %v3062_v56, %v2873_v30  ;;  %v1111_v39 = vrot.slane %v3062_v56, %v2865_v28 }
 0x217   : > { %v2405_v7 = vpack.c.bf16 %v1456_v49, %v1455_v15  ;;  %v1508_v54 = vpop.permute.xlu1 %1507  ;;  %v1744_v19 = vpop.permute.xlu0 %1743  ;;  %v1115_v34 = vrot.slane %v3062_v56, %v2868_v29  ;;  %1495 = vst [vmem:[#allocation2 + $0x28] sm:$0xcc] %v1487_v42  ;;  %v3582_v61 = vrot.slane %v2988_v35, %v2862_v27  ;;  %v3584_v49 = vrot.slane %v2952_v1, %v2868_v29 }
 0x218   : > { %v2416_v43 = vpack.c.bf16 %v1804_v12, %v1803_v25  ;;  %v1515_v36 = vsel %vm1513_vm3, %v1508_v54, %v3160_v4  ;;  %v1516_v26 = vsel %vm1513_vm3, %v3142_v14, %v1508_v54  ;;  %v1746_v3 = vsel %vm1745_vm0, %v3154_v24, %v1744_v19 }
 0x219   : > { %v1488_v41 = vrot.slane %v2405_v7, 6  ;;  %v1571_v13 = vmul.f32 %v3582_v61, %v1516_v26  ;;  %v1572_v63 = vmul.f32 %v1550_v45, %v1515_v36  ;;  %v1753_v16 = vsel %vm1745_vm0, %v1744_v19, %v2915_v47 }
 0x21a   : > { %v3583_v14 = vrot.slane %v3024_v33, %v2862_v27  ;;  %v960_v24 = vsel %vm956_vm5, %v3048_v2, %v3165_v40  ;;  %1841 = vst [vmem:[#allocation2 + $0x70] sm:$0x33] %v2416_v43  ;;  %v1805_v17 = vmul.f32 %v3584_v49, %v1746_v3  ;;  %v1806_v45 = vmul.f32 %v1790_v6, %v1753_v16 }
 0x21b   : > { %v1078_v47 = vsel %vm1074_vm8, %v3088_v58, %v3172_v38  ;;  %v847_v12 = vsel %vm843_vm7, %v3086_v57, %v3174_v8  ;;  %v957_v2 = vsel %vm956_vm5, %v3170_v59, %v3246_v5  ;;  %1496 = vst [vmem:[#allocation2 + $0x40] sm:$0xcc] %v1488_v41  ;;  %v2408_v42 = vpack.c.bf16 %v1572_v63, %v1571_v13  ;;  %v1512_v1 = vpop.permute.xlu1 %1511  ;;  %v1622_v25 = vpop.permute.xlu0 %1621 }
 0x21c   : > { %v3349_v15 = vmul.f32 %v3583_v14, %v1192_v9  ;;  %v2417_v6 = vpack.c.bf16 %v1806_v45, %v1805_v17  ;;  %v1514_v9 = vsel %vm1513_vm3, %v3160_v4, %v1512_v1  ;;  %v1521_v58 = vsel %vm1513_vm3, %v1512_v1, %v2931_v52  ;;  %v2506_v7 = vld [vmem:[#allocation2] ss:$48 sps:$4 sm:$0xff]   ;;  %v2508_v54 = vld [vmem:[#allocation2 + $0x4] ss:$48 sps:$4 sm:$0xff]   ;;  %v3593_v17 = vld [vmem:[#allocation13_spill] sm:$0xff] }
 0x21d   : > { %v1629_v57 = vsel %vm1627_vm2, %v1622_v25, %v3158_v23  ;;  %1609 = vst [vmem:[#allocation2 + $0x98] sm:$0x33] %v2408_v42  ;;  %v3585_v5 = vrot.slane %v2988_v35, %v2868_v29  ;;  %v3586_v43 = vrot.slane %v2988_v35, %v2873_v30  ;;  %v1630_v4 = vsel %vm1627_vm2, %v3144_v37, %v1622_v25 }
 0x21e   : > { %v3587_v52 = vrot.slane %v2986_v32, %v2865_v28  ;;  %v3588_v3 = vrot.slane %v3022_v31, %v2862_v27  ;;  %v3589_v61 = vrot.slane %v3062_v56, %v2862_v27  ;;  %v3590_v35 = vrot.slane %v3060_v11, %v2862_v27  ;;  %1842 = vst [vmem:[#allocation2 + $0x90] sm:$0x33] %v2417_v6  ;;  %v3594_v6 = vld [vmem:[#allocation12_spill] sm:$0xff] }
 0x21f   : > { %v1573_v19 = vmul.f32 %v3585_v5, %v1514_v9  ;;  %v1574_v36 = vmul.f32 %v3586_v43, %v1521_v58  ;;  %v3591_v37 = vrot.slane %v2986_v32, %v2862_v27  ;;  %2007 = vmatprep.subr.bf16.mxu0 %v2508_v54  ;;  %v1189_v14 = vsel %vm1188_vm6, %v3168_v44, %v3200_v22  ;;  %v1626_v42 = vpop.permute.xlu0 %1625 }
 0x220   : > { %v1686_v26 = vmul.f32 %v3587_v52, %v1629_v57  ;;  %v1014_v41 = vmul.f32 %v3588_v3, %v960_v24  ;;  %v3397_v13 = vmul.f32 %v3589_v61, %v1078_v47  ;;  %v3402_v63 = vmul.f32 %v3590_v35, %v847_v12  ;;  %v951_v12 = vpop.permute.xlu1 %950  ;;  %2008 = vmatpush1.bf16.msra.mxu0 %v2506_v7 }
 0x221   : > { %v1685_v16 = vmul.f32 %v3591_v37, %v1630_v4  ;;  %v3592_v24 = vrot.slane %v3022_v31, %v2873_v30  ;;  %v844_v45 = vsel %vm843_vm7, %v3593_v17, %v3274_v10  ;;  %v2409_v47 = vpack.c.bf16 %v1574_v36, %v1573_v19  ;;  %v1862_v9 = vld [vmem:[#allocation2 + $0x70] sm:$0x33] }
 0x222   : > { %v958_v1 = vsel %vm956_vm5, %v951_v12, %v3170_v59  ;;  %v959_v22 = vsel %vm956_vm5, %v3165_v40, %v951_v12  ;;  %v1635_v59 = vsel %vm1627_vm2, %v1626_v42, %v3594_v6  ;;  %v2365_v57 = vcombine.high %v1862_v9, %v1862_v9  ;;  %v1855_v28 = vld [vmem:[#allocation2 + $0x40] sm:$0xff] }
 0x223   : > { %v1017_v49 = vmul.f32 %v3592_v24, %v957_v2  ;;  %v2412_v27 = vpack.c.bf16 %v1686_v26, %v1685_v16  ;;  %v1628_v2 = vsel %vm1627_vm2, %v3158_v23, %v1626_v42  ;;  %1610 = vst [vmem:[#allocation2 + $0x60] sm:$0x33] %v2409_v47  ;;  %v1015_v10 = vmul.f32 %v993_v46, %v959_v22  ;;  %v3595_v46 = vld [vmem:[#allocation14_spill] sm:$0xff]  ;;  %v1183_v36 = vpop.permute.xlu0 %1182 }
 0x224   : > { %v1016_v25 = vmul.f32 %v997_v62, %v958_v1  ;;  %v1687_v40 = vmul.f32 %v1668_v55, %v1628_v2  ;;  %v1688_v23 = vmul.f32 %v1672_v53, %v1635_v59  ;;  %2369 = vmatmul.mubr.msk.bf16.vlgmr.msra.gmra.mxu0 %vm1964_vm9, %v3595_v46  ;;  %v2364_v31 = vcombine.low %v1862_v9, %v1862_v9  ;;  %v836_v43 = vpop.permute.xlu1 %835 }
 0x225   : > { %v1719_v58 = vrot.slane %v2412_v27, 6  ;;  %v3596_v62 = vrot.slane %v3024_v33, %v2873_v30  ;;  %v3597_v54 = vrot.slane %v3060_v11, %v2873_v30  ;;  %v2388_v55 = vpack.c.bf16 %v1015_v10, %v1014_v41  ;;  %2372 = vmatprep.subr.msk.bf16.mxu0 %vm1968_vm4, %v2365_v57  ;;  %v1863_v37 = vld [vmem:[#allocation2 + $0x90] sm:$0x33] }
 0x226   : > { %v2389_v19 = vpack.c.bf16 %v1017_v49, %v1016_v25  ;;  %v3598_v4 = vmov 0   ;;  %v2413_v32 = vpack.c.bf16 %v1688_v23, %v1687_v40  ;;  %v845_v53 = vsel %vm843_vm7, %v836_v43, %v3593_v17 }
 0x227   : > { %v1249_v7 = vmul.f32 %v3596_v62, %v1189_v14  ;;  %v903_v5 = vmul.f32 %v3597_v54, %v844_v45  ;;  %2107 = vmatprep.mubr.bf16.mxu0 %v3598_v4  ;;  %1727 = vst [vmem:[#allocation2 + $0x98] sm:$0xcc] %v1719_v58  ;;  %v846_v52 = vsel %vm843_vm7, %v3174_v8, %v836_v43  ;;  %v1048_v3 = vrot.slane %v2388_v55, 6  ;;  %v1069_v17 = vpop.permute.xlu0 %1068 }
 0x228   : > { %v1190_v26 = vsel %vm1188_vm6, %v1183_v36, %v3168_v44  ;;  %v1049_v41 = vrot.slane %v2389_v19, 6  ;;  %v901_v61 = vmul.f32 %v879_v51, %v846_v52  ;;  %v902_v35 = vmul.f32 %v883_v21, %v845_v53  ;;  %v1071_v21 = vpop.permute.xlu1 %1070 }
 0x229   : > { %v1720_v16 = vrot.slane %v2413_v32, 6  ;;  %v1191_v8 = vsel %vm1188_vm6, %v3162_v50, %v1183_v36  ;;  %v1248_v44 = vmul.f32 %v1229_v20, %v1190_v26  ;;  %v1982_v14 = vsel %vm1968_vm4, %v2364_v31, 0  ;;  %1056 = vst [vmem:[#allocation2 + $0x50] sm:$0xcc] %v1048_v3 }
 0x22a   : > { %1057 = vst [vmem:[#allocation2 + $0x18] sm:$0xcc] %v1049_v41  ;;  %v2384_v51 = vpack.c.bf16 %v901_v61, %v3402_v63  ;;  %v2385_v24 = vpack.c.bf16 %v903_v5, %v902_v35  ;;  %v1247_v11 = vmul.f32 %v1225_v60, %v1191_v8  ;;  %2086 = vmatpush1.bf16.msra.mxu0 %v1982_v14 }
 0x22b   : > { %v2367_v49 = vcombine.high %v1863_v37, %v1863_v37  ;;  %1728 = vst [vmem:[#allocation2 + $0x60] sm:$0xcc] %v1720_v16  ;;  %v2397_v50 = vpack.c.bf16 %v1249_v7, %v1248_v44  ;;  %v1075_v20 = vsel %vm1074_vm8, %v1071_v21, %v3244_v18  ;;  %v1076_v45 = vsel %vm1074_vm8, %v1069_v17, %v1071_v21 }
 0x22c   : > { %v1077_v63 = vsel %vm1074_vm8, %v3172_v38, %v1069_v17  ;;  %938 = vst [vmem:[#allocation2 + $0x50] sm:$0x33] %v2384_v51  ;;  %939 = vst [vmem:[#allocation2 + $0x18] sm:$0x33] %v2385_v24  ;;  %v2396_v33 = vpack.c.bf16 %v1247_v11, %v3349_v15  ;;  %v1135_v60 = vmul.f32 %v1119_v48, %v1075_v20 }
 0x22d   : > { %2374 = vmatprep.subr.msk.bf16.mxu1 %vm1968_vm4, %v2367_v49  ;;  %v1133_v18 = vmul.f32 %v1111_v39, %v1077_v63  ;;  %v1134_v47 = vmul.f32 %v1115_v34, %v1076_v45  ;;  %v1281_v0 = vrot.slane %v2397_v50, 6  ;;  %v2366_v38 = vcombine.low %v1863_v37, %v1863_v37 }
 0x22e   : > { %v1280_v12 = vrot.slane %v2396_v33, 6  ;;  %v2513_v27 = vld [vmem:[#allocation2 + $0x28] ss:$112 sps:$4 sm:$0xff]   ;;  %v2515_v1 = vld [vmem:[#allocation2 + $0x2c] ss:$112 sps:$4 sm:$0xff]  }
 0x22f   : > { %v2392_v42 = vpack.c.bf16 %v1133_v18, %v3397_v13  ;;  %v2393_v15 = vpack.c.bf16 %v1135_v60, %v1134_v47  ;;  %1289 = vst [vmem:[#allocation2 + $0x80] sm:$0xcc] %v1281_v0  ;;  %v1988_v30 = vsel %vm1968_vm4, %v2366_v38, 0  ;;  %2087 = vmatprep.subr.bf16.mxu0 %v2515_v1 }
 0x230   : > { %1288 = vst [vmem:[#allocation2 + $0x78] sm:$0xcc] %v1280_v12  ;;  %2127 = vmatpush1.bf16.msra.mxu1 %v1988_v30  ;;  %2088 = vmatpush1.bf16.msra.mxu0 %v2513_v27 }
 0x231   : > { %1170 = vst [vmem:[#allocation2 + $0x78] sm:$0x33] %v2392_v42  ;;  %1171 = vst [vmem:[#allocation2 + $0x80] sm:$0x33] %v2393_v15 }
 0x232   : > { %v1859_v29 = vld [vmem:[#allocation2 + $0x60] sm:$0xff] }
 0x233   : > { %v2358_v56 = vcombine.low %v1855_v28, %v1859_v29  ;;  %v2359_v48 = vcombine.high %v1855_v28, %v1859_v29 }
 0x234   : > { %v2161_v2 = vpop.permute.xlu0 %2160  ;;  %v2175_v25 = vpop.permute.xlu1 %2174 }
 0x235   : > { %2128 = vmatprep.subr.bf16.mxu1 %v2359_v48 }
 0x236   : > { %2129 = vmatpush1.bf16.msra.mxu1 %v2358_v56 }
 0x238   : > { %v2516_v39 = vld [vmem:[#allocation2 + $0x50] ss:$40 sps:$4 sm:$0xff]   ;;  %v2518_v34 = vld [vmem:[#allocation2 + $0x54] ss:$40 sps:$4 sm:$0xff]  }
 0x239   : > { %v2519_v13 = vld [vmem:[#allocation2 + $0x18] ss:$104 sps:$4 sm:$0xff]   ;;  %v2521_v22 = vld [vmem:[#allocation2 + $0x1c] ss:$104 sps:$4 sm:$0xff]   ;;  %2089 = vmatprep.subr.bf16.mxu0 %v2518_v34 }
 0x23a   : > { %2130 = vmatprep.subr.bf16.mxu1 %v2521_v22  ;;  %2090 = vmatpush1.bf16.msra.mxu0 %v2516_v39 }
 0x23b   : > { %2131 = vmatpush1.bf16.msra.mxu1 %v2519_v13 }
 0x23d   : > { %2373 = vmatmul.mubr.msk.bf16.vlgmr.msra.gmra.mxu0 %vm1964_vm9, %v3595_v46 }
 0x23e   : > { %2375 = vmatmul.mubr.msk.bf16.vlgmr.msra.gmra.mxu1 %vm1964_vm9, %v3595_v46 }
 0x2c7   : > { %v2068_v10 = vpop.f32.mrf.mxu1 }
 0x2c8   : > { %v2165_v6 = vmul.f32 %v2161_v2, %v2068_v10 }
 0x2c9   : > { %v2070_v59 = vpop.f32.mrf.mxu1 }
 0x2ca   : > { %v2166_v40 = vmul.f32 %v2161_v2, %v2070_v59  ;;  %v2179_v9 = vadd.f32 %v2175_v25, %v2165_v6 }
 0x2cb   : > { %v2072_v58 = vpop.f32.mrf.mxu1 }
 0x2cc   : > { %v2180_v23 = vadd.f32 %v2175_v25, %v2166_v40  ;;  %v2187_v57 = vmax.f32 %v2179_v9, 0.0 }
 0x2cd   : > { %v2073_v31 = vpop.f32.mrf.mxu1 }
 0x2ce   : > { %v2188_v62 = vmax.f32 %v2180_v23, 0.0  ;;  %2195 = vst [vmem:[%s3506_s14 + $0x10] sm:$0xff] %v2187_v57 }
 0x2d0   : > { %2196 = vst [vmem:[%s3506_s14 + $0x18] sm:$0xff] %v2188_v62 }
 0x2e4   : > { %v2027_v46 = vpop.f32.mrf.mxu0 }
 0x2e5   : > { %v2163_v7 = vmul.f32 %v2161_v2, %v2027_v46 }
 0x2e6   : > { %v2029_v54 = vpop.f32.mrf.mxu0 }
 0x2e7   : > { %v2164_v5 = vmul.f32 %v2161_v2, %v2029_v54  ;;  %v2177_v55 = vadd.f32 %v2175_v25, %v2163_v7 }
 0x2e8   : > { %v2031_v19 = vpop.f32.mrf.mxu0 }
 0x2e9   : > { %v2178_v43 = vadd.f32 %v2175_v25, %v2164_v5  ;;  %v2185_v36 = vmax.f32 %v2177_v55, 0.0 }
 0x2ea   : > { %v2032_v4 = vpop.f32.mrf.mxu0 }
 0x2eb   : > { %v2186_v32 = vmax.f32 %v2178_v43, 0.0  ;;  %2193 = vst [vmem:[%s3506_s14] sm:$0xff] %v2185_v36 }
 0x2ed   : > { %2194 = vst [vmem:[%s3506_s14 + $0x8] sm:$0xff] %v2186_v32 }
 0x2fd   : > { %v2109_v53 = vpop.f32.mrf.mxu0 }
 0x2fe   : > { %v2167_v52 = vmul.f32 %v2161_v2, %v2109_v53  ;;  %v2150_v26 = vpop.f32.mrf.mxu1 }
 0x2ff   : > { %v2169_v3 = vmul.f32 %v2161_v2, %v2150_v26  ;;  %v2111_v41 = vpop.f32.mrf.mxu0 }
 0x300   : > { %v2181_v61 = vadd.f32 %v2175_v25, %v2167_v52  ;;  %v2168_v35 = vmul.f32 %v2161_v2, %v2111_v41  ;;  %v2152_v37 = vpop.f32.mrf.mxu1 }
 0x301   : > { %v2183_v16 = vadd.f32 %v2175_v25, %v2169_v3  ;;  %v2170_v8 = vmul.f32 %v2161_v2, %v2152_v37  ;;  %v2113_v44 = vpop.f32.mrf.mxu0 }
 0x302   : > { %v2189_v14 = vmax.f32 %v2181_v61, 0.0  ;;  %v2182_v51 = vadd.f32 %v2175_v25, %v2168_v35  ;;  %v2154_v24 = vpop.f32.mrf.mxu1 }
 0x303   : > { %v2191_v11 = vmax.f32 %v2183_v16, 0.0  ;;  %v2184_v21 = vadd.f32 %v2175_v25, %v2170_v8  ;;  %v2114_v49 = vpop.f32.mrf.mxu0 }
 0x304   : > { %2197 = vst [vmem:[%s3506_s14 + $0x20] sm:$0xff] %v2189_v14  ;;  %v2190_v17 = vmax.f32 %v2182_v51, 0.0  ;;  %v2155_v50 = vpop.f32.mrf.mxu1 }
 0x305   : > { %2199 = vst [vmem:[%s3506_s14 + $0x30] sm:$0xff] %v2191_v11  ;;  %v2192_v20 = vmax.f32 %v2184_v21, 0.0 }
 0x306   : > { %2198 = vst [vmem:[%s3506_s14 + $0x28] sm:$0xff] %v2190_v17 }
 0x307   : > { %2200 = vst [vmem:[%s3506_s14 + $0x38] sm:$0xff] %v2192_v20 }
 0x308   : > { %2587 = shalt.err (!%p2584_p3)
}
 0x309   : > { %s2588_s9 = scalar_lea.hbm %s3519_s19, 1024  ;;  %s2592_s12 = scalar_lea.hbm %s3564_s6, 2048 }
 0x30a   : > { %p2589_p2 = scmp.ne.s32.totalorder %s3519_s19, %s2588_s9  ;;  %p2593_p7 = scmp.lt.s32.totalorder %s3519_s19, %s3564_s6 }
 0x30b   : > { %p2594_p6 = scmp.lt.s32.totalorder %s2592_s12, %s2588_s9 }
 0x30c   : > { %p2590_p4 = pnand %p2589_p2, %p2731_p5 }
 0x30d   : > { %p2595_p9 = por %p2594_p6, %p2593_p7 }
 0x30e   : > { %p2591_p13 = pneg %p2590_p4 }
 0x310   : > { %p2596_p10 = pnand %p2595_p9, %p2591_p13 }
 0x312   : > { %2599 = shalt.err (!%p2596_p10)
}
 0x313   : > { %2427 = dma.vmem_to_hbm [thread:$0]  (%p2731_p5), %s2217_s16, 1024, %s3519_s19, %s2202_s25  }
 0x314 PF: > { %p2444_p12 = scmp.ge.s32.totalorder %s2642_s24, 2  ;;  %s2228_s15 = sand.u32 1, %s2630_s21  }
 0x315   : > { %p3599_p8 = scmp.ne.s32.totalorder %s3572_s8, 0  ;;  %s2229_s17 = scalar_lea.sflag [#allocation5], %s2228_s15 }
 0x317   : > { %p2437_p11 = pnand %p2444_p12, %p3599_p8 }
 0x319   : > { %p2438_p0 = pneg %p2437_p11 }
 0x31b   : > { %2625 = dma.done.wait (%p2438_p0), %s2229_s17, 1024  }
 0x31c   : > { %2627 = vsyncadd (%p2438_p0), %s2229_s17, 4294966272  ;;  %p18_p1 = scmp.ge.s32.totalorder %s2718_s27, 4   ;;  %s3600_s21 = smov %s2634_s22 }
 0x31d   : > { %s3601_s22 = smov %s2638_s23  ;;  %s3602_s23 = smov %s2729_s30 }
 0x31e   : > { %s3603_s24 = smov %s2718_s27  ;;  %20 = sbr.rel (!%p18_p1) target bundleno = 5 (0x5), region = 96 }
 0x323   :  { %2234 = vsyncpa [#allocation4], 1 }
 0x324   :  { %2236 = vsyncpa [#allocation4 + $0x1], 1 }
 0x325   :  { %2237 = vsyncpa [#allocation7], 1 }
 0x326   :  { %2238 = vsyncpa [#allocation5], 1 }
 0x327   :  { %2240 = vsyncpa [#allocation5 + $0x1], 1 }

</bundles_post_ra>
